<compile_context>
chip_gen: v5e
topology: v5e:2x2
jax: 0.10.0
libtpu: 0.0.40
codegen_flags: <defaults>
</compile_context>

<pallas_src>
import functools

import jax
import jax.numpy as jnp
from jax.experimental import pallas as pl
from jax.experimental.pallas import tpu as pltpu


def gat_fused_kernel(x_ref, adj_bias_ref, slab1_ref, slab2_ref, b2_ref, out_ref,
                     *, heads, hid_ch, out_ch, neg_slope=0.2):
    """Fused 2-layer GAT forward, fully inside VMEM.

    x_ref        : [N, Fin+1]        node features with a ones column appended
    adj_bias_ref : [N, N]            0 where edge j->i (incl. self loops), else -1e30
    slab1_ref    : [Fin+1, H*C1+2H]  [w1 (with b1 in last row) | wa_src1 | wa_dst1]
    slab2_ref    : [H*C1, C2+2]      [w2 | wa_src2 | wa_dst2]
    b2_ref       : [1, C2]
    out_ref      : [N, C2]
    """
    x = x_ref[...]                        # f32
    adj_bias = adj_bias_ref[...]          # f32 additive mask
    n = x.shape[0]
    H, C1, C2 = heads, hid_ch, out_ch
    HC1 = H * C1

    # ----------------- layer 1: GATConv(in, hid, heads=H, concat=True) ------
    # One fused projection matmul (f32 x f32 -> f32 accumulation).
    proj1 = jnp.dot(x, slab1_ref[...],
                    preferred_element_type=jnp.float32)       # [N, HC1 + 2H]
    xp1 = proj1[:, :HC1]                                       # x@W1 + b1 (bias folded)
    a_src = proj1[:, HC1:HC1 + H]                              # [N, H] (no bias row)
    a_dst = proj1[:, HC1 + H:HC1 + 2 * H]                      # [N, H]

    # Batched-head logits: e[h, i, j] = leaky_relu(a_dst[i,h] + a_src[j,h]) + mask
    e = a_dst.T[:, :, None] + a_src.T[:, None, :]              # [H, N, N]
    e = jnp.where(e > 0, e, neg_slope * e)                     # LeakyReLU(0.2)
    e = e + adj_bias[None, :, :]                               # additive -inf mask
    # Softmax over incoming edges (lane axis). Self-loops guarantee a finite
    # row max, so exp() is exactly 0 on masked entries.
    e = e - jnp.max(e, axis=-1, keepdims=True)
    p = jnp.exp(e)                                             # [H, N, N]
    denom = jnp.sum(p, axis=-1, keepdims=True)
    alpha = p * pl.reciprocal(denom, approx=True)              # [H, N, N]

    # Aggregation: one explicit transpose of xp1 to head-major, then a single
    # batched matmul (no hidden dot_general relayouts).
    xp1_h = jnp.transpose(xp1.reshape(n, H, C1), (1, 0, 2))    # [H, N, C1]
    h1_h = jnp.einsum('hij,hjc->hic', alpha, xp1_h,
                      preferred_element_type=jnp.float32)      # [H, N, C1]
    h1 = jnp.transpose(h1_h, (1, 0, 2)).reshape(n, HC1)        # concat heads -> [N, H*C1]
    # ELU (f32); clamp the exp argument so the unselected branch is finite.
    h1 = jnp.where(h1 > 0, h1, jnp.exp(jnp.minimum(h1, 0.0)) - 1.0)

    # ----------- layer 2: GATConv(H*C1, out, heads=1, concat=False) ---------
    # (mean over a single head is the identity)
    proj2 = jnp.dot(h1, slab2_ref[...],
                    preferred_element_type=jnp.float32)        # [N, C2 + 2]
    xp2 = proj2[:, :C2]                                        # [N, C2]
    a_src2 = proj2[:, C2:C2 + 1]                               # [N, 1]
    a_dst2 = proj2[:, C2 + 1:C2 + 2]                           # [N, 1]

    e2 = a_dst2 + a_src2.T                                     # [N, N]
    e2 = jnp.where(e2 > 0, e2, neg_slope * e2)
    e2 = e2 + adj_bias
    e2 = e2 - jnp.max(e2, axis=-1, keepdims=True)
    p2 = jnp.exp(e2)
    denom2 = jnp.sum(p2, axis=-1, keepdims=True)
    alpha2 = p2 * pl.reciprocal(denom2, approx=True)           # [N, N]

    out = jnp.dot(alpha2, xp2,
                  preferred_element_type=jnp.float32) + b2_ref[...]  # [N, C2]
    out_ref[...] = out                                         # single full store


# ------------------------- parameter setup (glue) ---------------------------

def _glorot(key, shape):
    fan_in, fan_out = shape[0], shape[1]
    limit = jnp.sqrt(6.0 / (fan_in + fan_out))
    return jax.random.uniform(key, shape, jnp.float32, -limit, limit)


def _fold_att(w, att):
    """Fold per-head attention vector into the projection weight.

    w: [Fin, H*C], att: [H, C]  ->  [Fin, H] so that (x @ w_a)[n, h] equals
    <(x @ w)[n, h*C:(h+1)*C], att[h]>.
    """
    fin = w.shape[0]
    heads, c = att.shape
    return jnp.einsum('fhc,hc->fh', w.reshape(fin, heads, c), att)


def init_gat_params(key, in_ch, hid_ch, out_ch, heads):
    ks = jax.random.split(key, 6)
    p = {}
    # conv1: GATConv(in_ch, hid_ch, heads=heads, concat=True)
    w1 = _glorot(ks[0], (in_ch, heads * hid_ch))
    att_src1 = _glorot(ks[1], (heads, hid_ch))
    att_dst1 = _glorot(ks[2], (heads, hid_ch))
    p["w1"] = w1
    p["wa_src1"] = _fold_att(w1, att_src1)
    p["wa_dst1"] = _fold_att(w1, att_dst1)
    p["b1"] = jnp.zeros((heads * hid_ch,), jnp.float32)        # PyG bias init: zeros
    # conv2: GATConv(hid_ch*heads, out_ch, heads=1, concat=False)
    w2 = _glorot(ks[3], (heads * hid_ch, out_ch))
    att_src2 = _glorot(ks[4], (1, out_ch))
    att_dst2 = _glorot(ks[5], (1, out_ch))
    p["w2"] = w2
    p["wa_src2"] = _fold_att(w2, att_src2)
    p["wa_dst2"] = _fold_att(w2, att_dst2)
    p["b2"] = jnp.zeros((out_ch,), jnp.float32)
    return p


def pack_params(p, in_ch, hid_ch, out_ch, heads):
    """Pack per-layer weights/attention/bias into single matmul slabs."""
    H, C1 = heads, hid_ch
    HC1 = H * C1
    # Layer 1 slab: [Fin+1, HC1 + 2H]; last row carries b1 for the xp columns
    # (bias folding through the ones column is exact since softmax rows sum to 1)
    # and zeros for the attention columns (PyG computes attention pre-bias).
    slab1 = jnp.zeros((in_ch + 1, HC1 + 2 * H), jnp.float32)
    slab1 = slab1.at[:in_ch, :HC1].set(p["w1"])
    slab1 = slab1.at[in_ch, :HC1].set(p["b1"])
    slab1 = slab1.at[:in_ch, HC1:HC1 + H].set(p["wa_src1"])
    slab1 = slab1.at[:in_ch, HC1 + H:].set(p["wa_dst1"])
    # Layer 2 slab: [HC1, C2 + 2]
    slab2 = jnp.concatenate([p["w2"], p["wa_src2"], p["wa_dst2"]], axis=1)
    b2 = p["b2"].reshape(1, out_ch)
    return slab1, slab2, b2


def build_adj_bias(edge_index, n):
    """Additive mask: 0 where edge j -> i (with self loops, PyG default), else -1e30."""
    src, dst = edge_index[0], edge_index[1]
    adj = jnp.zeros((n, n), jnp.float32).at[dst, src].set(1.0)
    adj = jnp.maximum(adj, jnp.eye(n, dtype=jnp.float32))      # remove+add self loops
    return jnp.where(adj > 0, 0.0, -1e30).astype(jnp.float32)


def gat_forward(params, x, edge_index, *, hid_ch, out_ch, heads):
    n, in_ch = x.shape
    adj_bias = build_adj_bias(edge_index, n)
    x_aug = jnp.concatenate([x, jnp.ones((n, 1), jnp.float32)], axis=1)  # ones col for bias fold
    slab1, slab2, b2 = pack_params(params, in_ch, hid_ch, out_ch, heads)
    kernel = functools.partial(gat_fused_kernel, heads=heads, hid_ch=hid_ch,
                               out_ch=out_ch)
    # dropout(p=0.6) on x and on attention coefficients -> identity in eval mode
    return pl.pallas_call(
        kernel,
        out_shape=jax.ShapeDtypeStruct((n, out_ch), jnp.float32),
        in_specs=[pl.BlockSpec(memory_space=pltpu.MemorySpace.VMEM)] * 5,
        out_specs=pl.BlockSpec(memory_space=pltpu.MemorySpace.VMEM),
    )(x_aug, adj_bias, slab1, slab2, b2)


if __name__ == "__main__":
    key = jax.random.PRNGKey(0)
    k_x, k_e1, k_e2, k_p = jax.random.split(key, 4)

    N, IN_CH, HID_CH, OUT_CH, HEADS = 16, 8, 8, 4, 8

    x = jax.random.normal(k_x, (N, IN_CH), jnp.float32)

    # Graph: a ring plus 16 random extra edges.
    ring_src = jnp.arange(N, dtype=jnp.int32)
    ring_dst = (ring_src + 1) % N
    extra_src = jax.random.randint(k_e1, (16,), 0, N, jnp.int32)
    extra_dst = jax.random.randint(k_e2, (16,), 0, N, jnp.int32)
    edge_index = jnp.stack([jnp.concatenate([ring_src, extra_src]),
                            jnp.concatenate([ring_dst, extra_dst])])  # [2, 32]

    params = init_gat_params(k_p, IN_CH, HID_CH, OUT_CH, HEADS)

    out = gat_forward(params, x, edge_index,
                      hid_ch=HID_CH, out_ch=OUT_CH, heads=HEADS)
    jax.block_until_ready(out)
    assert out.shape == (N, OUT_CH)
    assert bool(jnp.all(jnp.isfinite(out)))
    print("KERNEL_OK")
</pallas_src>

<mosaic_0001>
module attributes {stable_mosaic.version = 11 : i64} {
  func.func @gat_fused_kernel(%arg0: memref<16x9xf32, #tpu.memory_space<vmem>>, %arg1: memref<16x16xf32, #tpu.memory_space<vmem>>, %arg2: memref<9x80xf32, #tpu.memory_space<vmem>>, %arg3: memref<64x6xf32, #tpu.memory_space<vmem>>, %arg4: memref<1x4xf32, #tpu.memory_space<vmem>>, %arg5: memref<16x4xf32, #tpu.memory_space<vmem>>) attributes {dimension_semantics = [], scalar_prefetch = 0 : i64, scratch_operands = 0 : i64, tpu.core_type = #tpu.core_type<tc>} {
    %c0 = arith.constant 0 : index
    %c0_0 = arith.constant 0 : index
    %0 = vector.load %arg0[%c0, %c0_0] : memref<16x9xf32, #tpu.memory_space<vmem>>, vector<16x9xf32>
    %c0_1 = arith.constant 0 : index
    %c0_2 = arith.constant 0 : index
    %1 = vector.load %arg1[%c0_1, %c0_2] : memref<16x16xf32, #tpu.memory_space<vmem>>, vector<16x16xf32>
    %c0_3 = arith.constant 0 : index
    %c0_4 = arith.constant 0 : index
    %2 = vector.load %arg2[%c0_3, %c0_4] : memref<9x80xf32, #tpu.memory_space<vmem>>, vector<9x80xf32>
    %cst = arith.constant dense<0.000000e+00> : vector<16x80xf32>
    %3 = tpu.matmul %0, %2, %cst {dimension_numbers = #tpu.dot_dimension_numbers<[1], [0], [0], [1], [0, 0, 1, 1], [], []>} : vector<16x9xf32>, vector<9x80xf32>, vector<16x80xf32> -> vector<16x80xf32>
    %4 = vector.extract_strided_slice %3 {offsets = [0, 0], sizes = [16, 64], strides = [1, 1]} : vector<16x80xf32> to vector<16x64xf32>
    %5 = vector.extract_strided_slice %3 {offsets = [0, 64], sizes = [16, 8], strides = [1, 1]} : vector<16x80xf32> to vector<16x8xf32>
    %6 = vector.extract_strided_slice %3 {offsets = [0, 72], sizes = [16, 8], strides = [1, 1]} : vector<16x80xf32> to vector<16x8xf32>
    %7 = tpu.transpose %6, [1, 0] : vector<16x8xf32> -> vector<8x16xf32>
    %8 = vector.shape_cast %7 : vector<8x16xf32> to vector<8x16x1xf32>
    %9 = tpu.transpose %5, [1, 0] : vector<16x8xf32> -> vector<8x16xf32>
    %10 = vector.shape_cast %9 : vector<8x16xf32> to vector<8x1x16xf32>
    %11 = vector.broadcast %8 : vector<8x16x1xf32> to vector<8x16x16xf32>
    %12 = vector.broadcast %10 : vector<8x1x16xf32> to vector<8x16x16xf32>
    %13 = arith.addf %11, %12 : vector<8x16x16xf32>
    %cst_5 = arith.constant 0.000000e+00 : f32
    %14 = vector.broadcast %cst_5 : f32 to vector<8x16x16xf32>
    %15 = arith.cmpf ogt, %13, %14 : vector<8x16x16xf32>
    %cst_6 = arith.constant 2.000000e-01 : f32
    %16 = vector.broadcast %cst_6 : f32 to vector<8x16x16xf32>
    %17 = arith.mulf %16, %13 : vector<8x16x16xf32>
    %18 = arith.select %15, %13, %17 : vector<8x16x16xi1>, vector<8x16x16xf32>
    %19 = vector.shape_cast %1 : vector<16x16xf32> to vector<1x16x16xf32>
    %20 = vector.broadcast %19 : vector<1x16x16xf32> to vector<8x16x16xf32>
    %21 = arith.addf %18, %20 : vector<8x16x16xf32>
    %cst_7 = arith.constant dense<0xFF800000> : vector<8x16xf32>
    %22 = vector.multi_reduction <maximumf>, %21, %cst_7 [2] : vector<8x16x16xf32> to vector<8x16xf32>
    %23 = vector.shape_cast %22 : vector<8x16xf32> to vector<8x16x1xf32>
    %24 = vector.broadcast %23 : vector<8x16x1xf32> to vector<8x16x16xf32>
    %25 = arith.subf %21, %24 : vector<8x16x16xf32>
    %26 = math.exp %25 : vector<8x16x16xf32>
    %cst_8 = arith.constant dense<0.000000e+00> : vector<8x16xf32>
    %27 = vector.multi_reduction <add>, %26, %cst_8 [2] : vector<8x16x16xf32> to vector<8x16xf32>
    %28 = vector.shape_cast %27 : vector<8x16xf32> to vector<8x16x1xf32>
    %29 = tpu.reciprocal %28 {approx = true} : vector<8x16x1xf32> -> vector<8x16x1xf32>
    %30 = vector.broadcast %29 : vector<8x16x1xf32> to vector<8x16x16xf32>
    %31 = arith.mulf %26, %30 : vector<8x16x16xf32>
    %32 = vector.shape_cast %4 : vector<16x64xf32> to vector<16x8x8xf32>
    %33 = tpu.transpose %32, [1, 0, 2] : vector<16x8x8xf32> -> vector<8x16x8xf32>
    "tpu.trace_start"() <{level = 10 : i32, message = "hij,hjc->hic"}> : () -> ()
    %cst_9 = arith.constant dense<0.000000e+00> : vector<8x16x8xf32>
    %34 = tpu.matmul %31, %33, %cst_9 {dimension_numbers = #tpu.dot_dimension_numbers<[2], [1], [1], [2], [0, 0, 0, 1, 1, 2], [0], [0]>} : vector<8x16x16xf32>, vector<8x16x8xf32>, vector<8x16x8xf32> -> vector<8x16x8xf32>
    "tpu.trace_stop"() : () -> ()
    %35 = tpu.transpose %34, [1, 0, 2] : vector<8x16x8xf32> -> vector<16x8x8xf32>
    %36 = vector.shape_cast %35 : vector<16x8x8xf32> to vector<16x64xf32>
    %cst_10 = arith.constant 0.000000e+00 : f32
    %37 = vector.broadcast %cst_10 : f32 to vector<16x64xf32>
    %38 = arith.cmpf ogt, %36, %37 : vector<16x64xf32>
    %cst_11 = arith.constant 0.000000e+00 : f32
    %39 = vector.broadcast %cst_11 : f32 to vector<16x64xf32>
    %40 = arith.minimumf %36, %39 : vector<16x64xf32>
    %41 = math.exp %40 : vector<16x64xf32>
    %cst_12 = arith.constant 1.000000e+00 : f32
    %42 = vector.broadcast %cst_12 : f32 to vector<16x64xf32>
    %43 = arith.subf %41, %42 : vector<16x64xf32>
    %44 = arith.select %38, %36, %43 : vector<16x64xi1>, vector<16x64xf32>
    %c0_13 = arith.constant 0 : index
    %c0_14 = arith.constant 0 : index
    %45 = vector.load %arg3[%c0_13, %c0_14] : memref<64x6xf32, #tpu.memory_space<vmem>>, vector<64x6xf32>
    %cst_15 = arith.constant dense<0.000000e+00> : vector<16x6xf32>
    %46 = tpu.matmul %44, %45, %cst_15 {dimension_numbers = #tpu.dot_dimension_numbers<[1], [0], [0], [1], [0, 0, 1, 1], [], []>} : vector<16x64xf32>, vector<64x6xf32>, vector<16x6xf32> -> vector<16x6xf32>
    %47 = vector.extract_strided_slice %46 {offsets = [0, 0], sizes = [16, 4], strides = [1, 1]} : vector<16x6xf32> to vector<16x4xf32>
    %48 = vector.extract_strided_slice %46 {offsets = [0, 4], sizes = [16, 1], strides = [1, 1]} : vector<16x6xf32> to vector<16x1xf32>
    %49 = vector.extract_strided_slice %46 {offsets = [0, 5], sizes = [16, 1], strides = [1, 1]} : vector<16x6xf32> to vector<16x1xf32>
    %50 = tpu.transpose %48, [1, 0] : vector<16x1xf32> -> vector<1x16xf32>
    %51 = vector.broadcast %49 : vector<16x1xf32> to vector<16x16xf32>
    %52 = vector.broadcast %50 : vector<1x16xf32> to vector<16x16xf32>
    %53 = arith.addf %51, %52 : vector<16x16xf32>
    %cst_16 = arith.constant 0.000000e+00 : f32
    %54 = vector.broadcast %cst_16 : f32 to vector<16x16xf32>
    %55 = arith.cmpf ogt, %53, %54 : vector<16x16xf32>
    %cst_17 = arith.constant 2.000000e-01 : f32
    %56 = vector.broadcast %cst_17 : f32 to vector<16x16xf32>
    %57 = arith.mulf %56, %53 : vector<16x16xf32>
    %58 = arith.select %55, %53, %57 : vector<16x16xi1>, vector<16x16xf32>
    %59 = arith.addf %58, %1 : vector<16x16xf32>
    %cst_18 = arith.constant dense<0xFF800000> : vector<16xf32>
    %60 = vector.multi_reduction <maximumf>, %59, %cst_18 [1] : vector<16x16xf32> to vector<16xf32>
    %61 = vector.shape_cast %60 : vector<16xf32> to vector<16x1xf32>
    %62 = vector.broadcast %61 : vector<16x1xf32> to vector<16x16xf32>
    %63 = arith.subf %59, %62 : vector<16x16xf32>
    %64 = math.exp %63 : vector<16x16xf32>
    %cst_19 = arith.constant dense<0.000000e+00> : vector<16xf32>
    %65 = vector.multi_reduction <add>, %64, %cst_19 [1] : vector<16x16xf32> to vector<16xf32>
    %66 = vector.shape_cast %65 : vector<16xf32> to vector<16x1xf32>
    %67 = tpu.reciprocal %66 {approx = true} : vector<16x1xf32> -> vector<16x1xf32>
    %68 = vector.broadcast %67 : vector<16x1xf32> to vector<16x16xf32>
    %69 = arith.mulf %64, %68 : vector<16x16xf32>
    %cst_20 = arith.constant dense<0.000000e+00> : vector<16x4xf32>
    %70 = tpu.matmul %69, %47, %cst_20 {dimension_numbers = #tpu.dot_dimension_numbers<[1], [0], [0], [1], [0, 0, 1, 1], [], []>} : vector<16x16xf32>, vector<16x4xf32>, vector<16x4xf32> -> vector<16x4xf32>
    %c0_21 = arith.constant 0 : index
    %c0_22 = arith.constant 0 : index
    %71 = vector.load %arg4[%c0_21, %c0_22] : memref<1x4xf32, #tpu.memory_space<vmem>>, vector<1x4xf32>
    %72 = vector.broadcast %71 : vector<1x4xf32> to vector<16x4xf32>
    %73 = arith.addf %70, %72 : vector<16x4xf32>
    %c0_23 = arith.constant 0 : index
    %c0_24 = arith.constant 0 : index
    %74 = vector.load %arg5[%c0_23, %c0_24] : memref<16x4xf32, #tpu.memory_space<vmem>>, vector<16x4xf32>
    tpu.vector_store %arg5[%c0_23, %c0_24], %73 {strides = array<i32>} : memref<16x4xf32, #tpu.memory_space<vmem>>, vector<16x4xf32>,
    return
  }
}

</mosaic_0001>

<bundles_post_ra>
// kernel: tpu_custom_call.1
= control target key start
LH: loop header
LB: loop body
LE: loop exit
PB: predicated region body
PF: predicated region fallthrough
CT: control target
= control target key end

     0   :  { %vm33_vm0 = vcmask 1040384   ;;  %vm26_vm1 = vcmask 72704   ;;  %s2116_s26 = smov 64   ;;  %s2119_s27 = smov 88   ;;  %v101_v9 = vlaneseq  ;;  %vm346_vm3 = vcmask 130048   ;;  %s2978_s2 = inlined_call_operand.vmem [shape: f32[9,80], index: 2, kind: input, shape index: {}]   ;;  %s2979_s0 = inlined_call_operand.vmem [shape: f32[16,9], index: 0, kind: input, shape index: {}]   ;;  %s2980_s1 = inlined_call_operand.vmem [shape: f32[16,16], index: 1, kind: input, shape index: {}]   ;;  %s2981_s3 = inlined_call_operand.vmem [shape: f32[64,6], index: 3, kind: input, shape index: {}]   ;;  %s2982_s4 = inlined_call_operand.vmem [shape: f32[1,4], index: 4, kind: input, shape index: {}]   ;;  %s2983_s5 = inlined_call_operand.vmem [shape: f32[16,4], index: 5, kind: output, shape index: {}]  }
   0x1   :  { %v25_v0 = vld [vmem:[%s2978_s2 + $0x8] sm:$0x1]  ;;  %v24_v1 = vld [vmem:[%s2978_s2] sm:$0xff]  ;;  %s2117_s2 = smov 56   ;;  %s2120_s28 = smov 112  }
   0x2   :  { %1941 = vmatpush.msk.msra.mxu0 %vm33_vm0, %v25_v0  ;;  %1966 = vmatpush.msk.msra.mxu3 %vm33_vm0, %v25_v0  ;;  %v20_v2 = vld [vmem:[%s2979_s0] sm:$0xff]  ;;  %v21_v3 = vld [vmem:[%s2979_s0 + $0x8] sm:$0xff]  ;;  %s2118_s0 = smov 96   ;;  %s2121_s29 = smov 80   ;;  %v102_v10 = vshrl.u32 %v101_v9, 7 }
   0x3   :  { %v2210_v36 = vld [vmem:[%s2980_s1] sm:$0xff]  ;;  %v2225_v54 = vld [vmem:[%s2980_s1 + $0x8] sm:$0xff]  ;;  %s2122_s9 = smov 120   ;;  %s2123_s10 = smov 104  }
   0x4   :  { %52 = vmatpush.msra.mxu0 %v24_v1  ;;  %1967 = vmatpush.msra.mxu3 %v24_v1  ;;  %v109_v19 = vadd.s32 8, %v102_v10  ;;  %s2124_s11 = smov 72   ;;  %s2127_s12 = smov 16  }
   0x5   :  { %1942 = vmatmul.msk.f32.vlgmr.msra.gmra.mxu0 %vm26_vm1, %v20_v2  ;;  %1943 = vmatmul.msk.f32.vlgmr.msra.gmra.mxu3 %vm26_vm1, %v21_v3  ;;  %s2128_s13 = smov 8   ;;  %s2129_s14 = smov 40  }
   0x6   :  { %2008 = vset.pattern.permute.xlu0 %v102_v10  ;;  %s2130_s15 = smov 48   ;;  %s2131_s16 = smov 32  }
   0x7   :  { %s2132_s17 = smov 24  }
  0x82   :  { %v2177_v4 = vpop.f32.mrf.mxu0 }
  0x83   :  { %204 = vrot.lane.b32.xlu1 %v2177_v4, %s2116_s26  ;;  %62 = vrot.lane.b32.xlu0 %v2177_v4, %s2117_s2 }
  0x88   :  { %v2182_v5 = vpop.f32.mrf.mxu3 }
  0x89   :  { %v2186_v6 = vpack.i.bf16 %v2177_v4, %v2182_v5 }
  0x8b   :  { %1989 = vrot.lane.b32.xlu2 %v2186_v6, %s2118_s0  ;;  %206 = vrot.lane.b32.xlu1 %v2182_v5, %s2116_s26 }
  0x8c   :  { %64 = vrot.lane.b32.xlu0 %v2182_v5, %s2117_s2 }
  0x93   :  { %1999 = vrot.lane.b32.xlu2 %v2186_v6, %s2119_s27 }
  0x94   :  { %1994 = vrot.lane.b32.xlu0 %v2186_v6, %s2120_s28 }
  0x9c   :  { %2004 = vrot.lane.b32.xlu0 %v2186_v6, %s2121_s29 }
  0xe5   :  { %v2195_v13 = vpop.permute.xlu2 %1989 }
  0xed   :  { %v2197_v14 = vpop.permute.xlu2 %1999 }
  0xf5   :  { %v205_v7 = vpop.permute.xlu1 %204  ;;  %v63_v8 = vpop.permute.xlu0 %62 }
  0xf6   :  { %210 = vxpose.xlu1.b32.start [1/2] (short) (narrow) %v205_v7, 8  ;;  %68 = vxpose.xlu2.b32.start [1/2] (short) (narrow) %v63_v8, 8 }
  0xfd   :  { %v207_v11 = vpop.permute.xlu1 %206 }
  0xfe   :  { %v65_v12 = vpop.permute.xlu0 %64  ;;  %211 = vxpose.xlu1.b32.end [2/2] (short) (narrow) %v207_v11, 8 }
  0xff   :  { %69 = vxpose.xlu2.b32.end [2/2] (short) (narrow) %v65_v12, 8 }
 0x106   :  { %v2199_v25 = vpop.permute.xlu0 %1994 }
 0x10e   :  { %v2204_v28 = vpop.permute.xlu0 %2004 }
 0x151   :  { %2009 = vset.pattern.permute.xlu1 %v102_v10 }
 0x161   :  { %2010 = vset.pattern.permute.xlu2 %v102_v10 }
 0x190   :  { %v84_v15 = vpop.trf.xlu2 }
 0x191   :  { %v126_v16 = vperm.slane %v84_v15, 2  ;;  %v113_v17 = vperm.slane %v84_v15, 1  ;;  %v100_v18 = vperm.slane %v84_v15, 0  ;;  %v139_v20 = vperm.slane %v84_v15, 3 }
 0x192   :  { %v191_v21 = vperm.slane %v84_v15, 7  ;;  %v165_v22 = vperm.slane %v84_v15, 5  ;;  %v178_v23 = vperm.slane %v84_v15, 6  ;;  %v152_v24 = vperm.slane %v84_v15, 4 }
 0x193   :  { %131 = vperm.xlu0 %2008, %v126_v16   ;;  %118 = vperm.xlu1 %2009, %v113_v17  }
 0x194   :  { %105 = vperm.xlu2 %2010, %v100_v18  }
 0x19a   :  { %v2201_v26 = vpop.trf.xlu1 }
 0x19b   :  { %144 = vperm.xlu0 %2008, %v139_v20   ;;  %2011 = vset.pattern.permute.xlu1 %v109_v19  ;;  %v243_v27 = vrot.slane %v2201_v26, 1  ;;  %v244_v31 = vrot.slane %v2201_v26, 2  ;;  %v250_v41 = vperm.slane %v2201_v26, 0  ;;  %v245_v45 = vrot.slane %v2201_v26, 3 }
 0x19c   :  { %2019 = vset.pattern.permute.xlu2 %v109_v19 }
 0x19d   :  { %v251_v29 = vperm.slane %v243_v27, 0  ;;  %v252_v34 = vperm.slane %v244_v31, 0  ;;  %v253_v52 = vperm.slane %v245_v45, 0  ;;  %v248_v31 = vrot.slane %v2201_v26, 6 }
 0x1a3   :  { %2012 = vset.pattern.permute.xlu0 %v109_v19  ;;  %137 = vperm.xlu1 %2011, %v126_v16  }
 0x1a4   :  { %202 = vperm.xlu2 %2019, %v191_v21  }
 0x1ab   :  { %124 = vperm.xlu1 %2011, %v113_v17   ;;  %111 = vperm.xlu0 %2012, %v100_v18   ;;  %v247_v18 = vrot.slane %v2201_v26, 5 }
 0x1b3   :  { %150 = vperm.xlu1 %2011, %v139_v20   ;;  %2014 = vset.pattern.permute.xlu0 %v102_v10 }
 0x1bb   :  { %2013 = vset.pattern.permute.xlu1 %v102_v10  ;;  %170 = vperm.xlu0 %2014, %v165_v22  }
 0x1c3   :  { %183 = vperm.xlu1 %2013, %v178_v23   ;;  %157 = vperm.xlu0 %2014, %v152_v24  }
 0x1cb   :  { %2018 = vset.pattern.permute.xlu1 %v109_v19  ;;  %2015 = vset.pattern.permute.xlu0 %v109_v19 }
 0x1d3   :  { %163 = vperm.xlu1 %2018, %v152_v24   ;;  %189 = vperm.xlu0 %2015, %v178_v23   ;;  %v255_v23 = vperm.slane %v247_v18, 0 }
 0x1db   :  { %2016 = vset.pattern.permute.xlu0 %v102_v10 }
 0x1e3   :  { %196 = vperm.xlu0 %2016, %v191_v21  }
 0x1eb   :  { %2017 = vset.pattern.permute.xlu0 %v109_v19 }
 0x1ee   :  { %v106_v43 = vpop.permute.xlu2 %105 }
 0x1ef   :  { %v266_v44 = vadd.f32 %v250_v41, %v106_v43 }
 0x1f1   :  { %v298_v51 = vmul.f32 0.2, %v266_v44  ;;  %vm282_vm6 = vcmp.gt.f32.partialorder %v266_v44, 0.0 }
 0x1f3   :  { %176 = vperm.xlu0 %2017, %v165_v22   ;;  %v314_v61 = vsel %vm282_vm6, %v266_v44, %v298_v51  ;;  %vm1755_vm6 = vcmask 195584  }
 0x1f4   :  { %v2235_v0 = vadd.f32 %v314_v61, %v2210_v36 }
 0x1f6   :  { %v347_v8 = vsel %vm346_vm3, %v2235_v0, -inf }
 0x205   :  { %v119_v30 = vpop.permute.xlu1 %118  ;;  %v132_v35 = vpop.permute.xlu0 %131 }
 0x206   :  { %v268_v32 = vadd.f32 %v251_v29, %v119_v30  ;;  %v270_v39 = vadd.f32 %v252_v34, %v132_v35 }
 0x208   :  { %vm284_vm2 = vcmp.gt.f32.partialorder %v268_v32, 0.0  ;;  %v300_v33 = vmul.f32 0.2, %v268_v32  ;;  %v302_v42 = vmul.f32 0.2, %v270_v39  ;;  %vm286_vm4 = vcmp.gt.f32.partialorder %v270_v39, 0.0 }
 0x20a   :  { %v316_v37 = vsel %vm284_vm2, %v268_v32, %v300_v33  ;;  %v318_v47 = vsel %vm286_vm4, %v270_v39, %v302_v42  ;;  %v256_v39 = vperm.slane %v248_v31, 0  ;;  %vm566_vm4 = vcmask 1047556  }
 0x20b   :  { %v2213_v38 = vadd.f32 %v316_v37, %v2210_v36  ;;  %v2220_v50 = vadd.f32 %v318_v47, %v2210_v36 }
 0x20d   :  { %v353_v40 = vsel %vm346_vm3, %v2213_v38, -inf  ;;  %v145_v53 = vpop.permute.xlu0 %144  ;;  %v359_v57 = vsel %vm346_vm3, %v2220_v50, -inf }
 0x20e   :  { %354 = vmax.xlane.f32.xlu2 %v353_v40  ;;  %v272_v58 = vadd.f32 %v253_v52, %v145_v53 }
 0x210   :  { %v304_v1 = vmul.f32 0.2, %v272_v58  ;;  %vm288_vm8 = vcmp.gt.f32.partialorder %v272_v58, 0.0 }
 0x212   :  { %v320_v12 = vsel %vm288_vm8, %v272_v58, %v304_v1  ;;  %v249_v1 = vrot.slane %v2201_v26, 7  ;;  %vm1761_vm8 = vcmask 326656  }
 0x213   :  { %v2245_v17 = vadd.f32 %v320_v12, %v2210_v36 }
 0x215   :  { %v138_v46 = vpop.permute.xlu1 %137  ;;  %v365_v22 = vsel %vm346_vm3, %v2245_v17, -inf }
 0x216   :  { %v271_v48 = vadd.f32 %v252_v34, %v138_v46  ;;  %v246_v34 = vrot.slane %v2201_v26, 4 }
 0x218   :  { %vm287_vm5 = vcmp.gt.f32.partialorder %v271_v48, 0.0  ;;  %v303_v49 = vmul.f32 0.2, %v271_v48 }
 0x21a   :  { %v319_v55 = vsel %vm287_vm5, %v271_v48, %v303_v49  ;;  %vm1750_vm5 = vcmask 64512  }
 0x21b   :  { %v2228_v56 = vadd.f32 %v319_v55, %v2225_v54 }
 0x21d   :  { %v125_v59 = vpop.permute.xlu1 %124  ;;  %360 = vmax.xlane.f32.xlu0 %v359_v57  ;;  %v362_v60 = vsel %vm346_vm3, %v2228_v56, -inf  ;;  %v112_v2 = vpop.permute.xlu0 %111 }
 0x21e   :  { %v269_v62 = vadd.f32 %v251_v29, %v125_v59  ;;  %363 = vmax.xlane.f32.xlu2 %v362_v60  ;;  %v267_v9 = vadd.f32 %v250_v41, %v112_v2  ;;  %v254_v41 = vperm.slane %v246_v34, 0  ;;  %v257_v2 = vperm.slane %v249_v1, 0 }
 0x220   :  { %vm285_vm7 = vcmp.gt.f32.partialorder %v269_v62, 0.0  ;;  %v301_v63 = vmul.f32 0.2, %v269_v62  ;;  %v299_v19 = vmul.f32 0.2, %v267_v9  ;;  %vm283_vm10 = vcmp.gt.f32.partialorder %v267_v9, 0.0 }
 0x222   :  { %v317_v3 = vsel %vm285_vm7, %v269_v62, %v301_v63  ;;  %v315_v29 = vsel %vm283_vm10, %v267_v9, %v299_v19  ;;  %vm1758_vm7 = vcmask 261120   ;;  %vm1767_vm10 = vcmask 457728  }
 0x223   :  { %v2238_v7 = vadd.f32 %v317_v3, %v2225_v54  ;;  %v2257_v33 = vadd.f32 %v315_v29, %v2225_v54 }
 0x225   :  { %v151_v10 = vpop.permute.xlu1 %150  ;;  %348 = vmax.xlane.f32.xlu0 %v347_v8  ;;  %v356_v11 = vsel %vm346_vm3, %v2238_v7, -inf  ;;  %v350_v40 = vsel %vm346_vm3, %v2257_v33, -inf }
 0x226   :  { %v273_v15 = vadd.f32 %v253_v52, %v151_v10  ;;  %357 = vmax.xlane.f32.xlu2 %v356_v11 }
 0x228   :  { %vm289_vm9 = vcmp.gt.f32.partialorder %v273_v15, 0.0  ;;  %v305_v16 = vmul.f32 0.2, %v273_v15 }
 0x22a   :  { %v321_v20 = vsel %vm289_vm9, %v273_v15, %v305_v16  ;;  %v203_v15 = vpop.permute.xlu2 %202  ;;  %vm1764_vm9 = vcmask 392192  }
 0x22b   :  { %v2249_v21 = vadd.f32 %v321_v20, %v2225_v54  ;;  %v281_v18 = vadd.f32 %v257_v2, %v203_v15 }
 0x22d   :  { %366 = vmax.xlane.f32.xlu0 %v365_v22  ;;  %v171_v24 = vpop.permute.xlu0 %170  ;;  %v368_v27 = vsel %vm346_vm3, %v2249_v21, -inf  ;;  %v313_v20 = vmul.f32 0.2, %v281_v18  ;;  %vm297_vm1 = vcmp.gt.f32.partialorder %v281_v18, 0.0 }
 0x22e   :  { %v276_v30 = vadd.f32 %v255_v23, %v171_v24  ;;  %369 = vmax.xlane.f32.xlu2 %v368_v27 }
 0x22f   :  { %v329_v27 = vsel %vm297_vm1, %v281_v18, %v313_v20 }
 0x230   :  { %vm292_vm11 = vcmp.gt.f32.partialorder %v276_v30, 0.0  ;;  %v308_v32 = vmul.f32 0.2, %v276_v30  ;;  %v2295_v29 = vadd.f32 %v329_v27, %v2225_v54 }
 0x232   :  { %v324_v35 = vsel %vm292_vm11, %v276_v30, %v308_v32  ;;  %vm1790_vm11 = vcmask 523264  }
 0x233   :  { %v2261_v37 = vadd.f32 %v324_v35, %v2210_v36 }
 0x235   :  { %v184_v42 = vpop.permute.xlu1 %183  ;;  %351 = vmax.xlane.f32.xlu0 %v350_v40  ;;  %v158_v43 = vpop.permute.xlu0 %157  ;;  %v377_v44 = vsel %vm346_vm3, %v2261_v37, -inf }
 0x236   :  { %v278_v45 = vadd.f32 %v256_v39, %v184_v42  ;;  %v274_v46 = vadd.f32 %v254_v41, %v158_v43  ;;  %378 = vmax.xlane.f32.xlu2 %v377_v44 }
 0x238   :  { %vm294_vm12 = vcmp.gt.f32.partialorder %v278_v45, 0.0  ;;  %v310_v47 = vmul.f32 0.2, %v278_v45  ;;  %v306_v48 = vmul.f32 0.2, %v274_v46  ;;  %vm290_vm13 = vcmp.gt.f32.partialorder %v274_v46, 0.0 }
 0x23a   :  { %v326_v49 = vsel %vm294_vm12, %v278_v45, %v310_v47  ;;  %v322_v53 = vsel %vm290_vm13, %v274_v46, %v306_v48 }
 0x23b   :  { %v2268_v51 = vadd.f32 %v326_v49, %v2210_v36  ;;  %v2273_v55 = vadd.f32 %v322_v53, %v2210_v36 }
 0x23d   :  { %v383_v52 = vsel %vm346_vm3, %v2268_v51, -inf  ;;  %v371_v58 = vsel %vm346_vm3, %v2273_v55, -inf }
 0x23e   :  { %384 = vmax.xlane.f32.xlu0 %v383_v52 }
 0x245   :  { %v190_v57 = vpop.permute.xlu0 %189  ;;  %v164_v30 = vpop.permute.xlu1 %163 }
 0x246   :  { %v279_v59 = vadd.f32 %v256_v39, %v190_v57  ;;  %372 = vmax.xlane.f32.xlu0 %v371_v58  ;;  %v275_v31 = vadd.f32 %v254_v41, %v164_v30 }
 0x248   :  { %vm295_vm14 = vcmp.gt.f32.partialorder %v279_v59, 0.0  ;;  %v311_v60 = vmul.f32 0.2, %v279_v59  ;;  %v307_v32 = vmul.f32 0.2, %v275_v31  ;;  %vm291_vm2 = vcmp.gt.f32.partialorder %v275_v31, 0.0 }
 0x24a   :  { %v327_v61 = vsel %vm295_vm14, %v279_v59, %v311_v60  ;;  %v323_v34 = vsel %vm291_vm2, %v275_v31, %v307_v32 }
 0x24b   :  { %v2278_v62 = vadd.f32 %v327_v61, %v2225_v54  ;;  %v2302_v39 = vadd.f32 %v323_v34, %v2225_v54 }
 0x24d   :  { %v386_v63 = vsel %vm346_vm3, %v2278_v62, -inf  ;;  %v374_v40 = vsel %vm346_vm3, %v2302_v39, -inf }
 0x24e   :  { %387 = vmax.xlane.f32.xlu2 %v386_v63 }
 0x255   :  { %v197_v3 = vpop.permute.xlu0 %196 }
 0x256   :  { %v280_v8 = vadd.f32 %v257_v2, %v197_v3 }
 0x258   :  { %vm296_vm15 = vcmp.gt.f32.partialorder %v280_v8, 0.0  ;;  %v312_v9 = vmul.f32 0.2, %v280_v8 }
 0x25a   :  { %v328_v10 = vsel %vm296_vm15, %v280_v8, %v312_v9 }
 0x25b   :  { %v2284_v11 = vadd.f32 %v328_v10, %v2210_v36 }
 0x25d   :  { %v389_v12 = vsel %vm346_vm3, %v2284_v11, -inf }
 0x25e   :  { %390 = vmax.xlane.f32.xlu1 %v389_v12 }
 0x265   :  { %v177_v16 = vpop.permute.xlu0 %176 }
 0x266   :  { %v277_v19 = vadd.f32 %v255_v23, %v177_v16  ;;  %2026 = vrot.lane.b32.xlu2 %v2186_v6, %s2122_s9  ;;  %v392_v23 = vsel %vm346_vm3, %v2295_v29, -inf }
 0x268   :  { %vm293_vm0 = vcmp.gt.f32.partialorder %v277_v19, 0.0  ;;  %v309_v26 = vmul.f32 0.2, %v277_v19 }
 0x26a   :  { %v325_v22 = vsel %vm293_vm0, %v277_v19, %v309_v26  ;;  %vm1934_vm0 = vcmask 31744  }
 0x26b   :  { %v2290_v24 = vadd.f32 %v325_v22, %v2225_v54 }
 0x26d   :  { %v380_v36 = vsel %vm346_vm3, %v2290_v24, -inf }
 0x26e   :  { %381 = vmax.xlane.f32.xlu0 %v380_v36 }
 0x276   :  { %393 = vmax.xlane.f32.xlu0 %v392_v23 }
 0x277   :  { %2021 = vrot.lane.b32.xlu1 %v2186_v6, %s2123_s10 }
 0x281   :  { %v355_v35 = vpop.xlane.xlu2 %354 }
 0x282   :  { %v397_v59 = vsub.f32 %v2213_v38, %v355_v35 }
 0x284   :  { %v415_v63 = vmul.f32 1.442695, %v397_v59 }
 0x28a   :  { %2031 = vrot.lane.b32.xlu0 %v2186_v6, %s2124_s11 }
 0x28f   :  { %375 = vmax.xlane.f32.xlu2 %v374_v40 }
 0x290   :  { %v361_v42 = vpop.xlane.xlu0 %360 }
 0x291   :  { %v399_v43 = vsub.f32 %v2220_v50, %v361_v42  ;;  %v364_v44 = vpop.xlane.xlu2 %363 }
 0x292   :  { %v400_v41 = vsub.f32 %v2228_v56, %v364_v44 }
 0x293   :  { %v419_v45 = vmul.f32 1.442695, %v399_v43 }
 0x294   :  { %v421_v46 = vmul.f32 1.442695, %v400_v41 }
 0x295   :  { %2038 = vpow2.f32 %v419_v45 }
 0x296   :  { %2040 = vpow2.f32 %v421_v46 }
 0x298   :  { %v349_v47 = vpop.xlane.xlu0 %348 }
 0x299   :  { %v395_v48 = vsub.f32 %v2235_v0, %v349_v47  ;;  %v358_v6 = vpop.xlane.xlu2 %357 }
 0x29a   :  { %v398_v52 = vsub.f32 %v2238_v7, %v358_v6 }
 0x29b   :  { %v2309_v49 = vpop.eup %2038  ;;  %v411_v54 = vmul.f32 1.442695, %v395_v48 }
 0x29c   :  { %v455_v53 = vsel %vm346_vm3, %v2309_v49, 0.0  ;;  %v417_v50 = vmul.f32 1.442695, %v398_v52  ;;  %v2314_v56 = vpop.eup %2040 }
 0x29d   :  { %2042 = vpow2.f32 %v411_v54  ;;  %456 = vadd.xlane.f32.xlu2 %v455_v53  ;;  %v458_v7 = vsel %vm346_vm3, %v2314_v56, 0.0 }
 0x29e   :  { %2044 = vpow2.f32 %v417_v50  ;;  %v1997_v50 = vunpack.i.h.bf16 %v2199_v25 }
 0x29f   :  { %2046 = vpow2.f32 %v415_v63 }
 0x2a0   :  { %v367_v57 = vpop.xlane.xlu0 %366  ;;  %v565_v63 = vrot.slane %v1997_v50, 4 }
 0x2a1   :  { %v370_v58 = vpop.xlane.xlu2 %369  ;;  %v401_v38 = vsub.f32 %v2245_v17, %v367_v57  ;;  %v1996_v57 = vunpack.i.l.bf16 %v2199_v25 }
 0x2a2   :  { %v402_v60 = vsub.f32 %v2249_v21, %v370_v58 }
 0x2a3   :  { %v2317_v0 = vpop.eup %2042  ;;  %v423_v8 = vmul.f32 1.442695, %v401_v38  ;;  %v568_v38 = vrot.slane %v2177_v4, 4 }
 0x2a4   :  { %v443_v61 = vsel %vm346_vm3, %v2317_v0, 0.0  ;;  %v425_v1 = vmul.f32 1.442695, %v402_v60  ;;  %v2324_v3 = vpop.eup %2044  ;;  %v1992_v60 = vunpack.i.h.bf16 %v2195_v13 }
 0x2a5   :  { %459 = vadd.xlane.f32.xlu2 %v458_v7  ;;  %444 = vadd.xlane.f32.xlu1 %v443_v61  ;;  %v452_v21 = vsel %vm346_vm3, %v2324_v3, 0.0  ;;  %v2329_v9 = vpop.eup %2046 }
 0x2a6   :  { %2048 = vpow2.f32 %v425_v1  ;;  %v449_v18 = vsel %vm346_vm3, %v2329_v9, 0.0  ;;  %v678_v1 = vrot.slane %v1996_v57, 4 }
 0x2a7   :  { %2050 = vpow2.f32 %v423_v8 }
 0x2a8   :  { %v352_v2 = vpop.xlane.xlu0 %351 }
 0x2a9   :  { %v396_v15 = vsub.f32 %v2257_v33, %v352_v2  ;;  %v379_v20 = vpop.xlane.xlu2 %378  ;;  %v680_v2 = vrot.slane %v2182_v5, 4 }
 0x2aa   :  { %v405_v33 = vsub.f32 %v2261_v37, %v379_v20  ;;  %v569_v20 = vsel %vm566_vm4, %v1997_v50, %v568_v38 }
 0x2ab   :  { %v413_v26 = vmul.f32 1.442695, %v396_v15 }
 0x2ac   :  { %v2331_v10 = vpop.eup %2048  ;;  %v431_v32 = vmul.f32 1.442695, %v405_v33 }
 0x2ad   :  { %453 = vadd.xlane.f32.xlu2 %v452_v21  ;;  %v464_v19 = vsel %vm346_vm3, %v2331_v10, 0.0  ;;  %v2339_v22 = vpop.eup %2050  ;;  %v1991_v21 = vunpack.i.l.bf16 %v2195_v13  ;;  %v681_v13 = vsel %vm566_vm4, %v1996_v57, %v680_v2  ;;  %v2002_v57 = vunpack.i.h.bf16 %v2197_v14 }
 0x2ae   :  { %v461_v27 = vsel %vm346_vm3, %v2339_v22, 0.0 }
 0x2b1   :  { %v385_v12 = vpop.xlane.xlu0 %384 }
 0x2b2   :  { %v407_v16 = vsub.f32 %v2268_v51, %v385_v12 }
 0x2b4   :  { %v435_v17 = vmul.f32 1.442695, %v407_v16  ;;  %450 = vadd.xlane.f32.xlu0 %v449_v18 }
 0x2b5   :  { %465 = vadd.xlane.f32.xlu2 %v464_v19 }
 0x2b6   :  { %2052 = vpow2.f32 %v435_v17 }
 0x2b7   :  { %2054 = vpow2.f32 %v413_v26  ;;  %v567_v26 = vsel %vm566_vm4, %v565_v63, %v2177_v4 }
 0x2b9   :  { %v373_v36 = vpop.xlane.xlu0 %372 }
 0x2ba   :  { %v403_v51 = vsub.f32 %v2273_v55, %v373_v36  ;;  %v679_v36 = vsel %vm566_vm4, %v678_v1, %v2182_v5 }
 0x2bc   :  { %v2345_v23 = vpop.eup %2052  ;;  %v427_v30 = vmul.f32 1.442695, %v403_v51  ;;  %462 = vadd.xlane.f32.xlu0 %v461_v27  ;;  %v2007_v51 = vunpack.i.h.bf16 %v2204_v28 }
 0x2bd   :  { %v479_v31 = vsel %vm346_vm3, %v2345_v23, 0.0  ;;  %v2349_v34 = vpop.eup %2054 }
 0x2be   :  { %2056 = vpow2.f32 %v427_v30  ;;  %480 = vadd.xlane.f32.xlu1 %v479_v31  ;;  %v446_v55 = vsel %vm346_vm3, %v2349_v34, 0.0 }
 0x2bf   :  { %2058 = vpow2.f32 %v431_v32 }
 0x2c1   :  { %v388_v35 = vpop.xlane.xlu2 %387 }
 0x2c2   :  { %v408_v37 = vsub.f32 %v2278_v62, %v388_v35 }
 0x2c4   :  { %v2354_v40 = vpop.eup %2056  ;;  %v437_v42 = vmul.f32 1.442695, %v408_v37  ;;  %447 = vadd.xlane.f32.xlu0 %v446_v55  ;;  %v704_v37 = vrot.slane %v1991_v21, 4 }
 0x2c5   :  { %v467_v43 = vsel %vm346_vm3, %v2354_v40, 0.0  ;;  %v2358_v44 = vpop.eup %2058 }
 0x2c6   :  { %2060 = vpow2.f32 %v437_v42  ;;  %468 = vadd.xlane.f32.xlu2 %v467_v43  ;;  %v473_v45 = vsel %vm346_vm3, %v2358_v44, 0.0 }
 0x2c9   :  { %v2027_v58 = vpop.permute.xlu2 %2026 }
 0x2ca   :  { %v2029_v61 = vunpack.i.h.bf16 %v2027_v58  ;;  %v2028_v25 = vunpack.i.l.bf16 %v2027_v58  ;;  %v2001_v58 = vunpack.i.l.bf16 %v2197_v14 }
 0x2cc   :  { %v2362_v41 = vpop.eup %2060  ;;  %474 = vadd.xlane.f32.xlu0 %v473_v45  ;;  %v580_v16 = vrot.slane %v2029_v61, 4  ;;  %v692_v32 = vrot.slane %v2028_v25, 4 }
 0x2cd   :  { %v482_v62 = vsel %vm346_vm3, %v2362_v41, 0.0 }
 0x2ce   :  { %483 = vadd.xlane.f32.xlu1 %v482_v62 }
 0x2d1   :  { %v391_v46 = vpop.xlane.xlu1 %390 }
 0x2d2   :  { %v409_v47 = vsub.f32 %v2284_v11, %v391_v46  ;;  %v2125_v11 = vmov 1983009808  }
 0x2d3   :  { %v571_v7 = vunpack.c.l.s4 %v2125_v11 }
 0x2d4   :  { %v439_v48 = vmul.f32 1.442695, %v409_v47  ;;  %v590_v47 = vrot.slane %v2007_v51, 4 }
 0x2d5   :  { %v2378_v8 = vunpack.c.0.s8 %v571_v7 }
 0x2d6   :  { %2062 = vpow2.f32 %v439_v48 }
 0x2d7   :  { %v577_v42 = vperm.slane %v569_v20, %v2378_v8  ;;  %v689_v43 = vperm.slane %v681_v13, %v2378_v8  ;;  %v685_v46 = vperm.slane %v679_v36, %v2378_v8 }
 0x2d9   :  { %v628_v11 = vrot.slane %v577_v42, 4  ;;  %v728_v2 = vrot.slane %v685_v46, 4  ;;  %v740_v38 = vrot.slane %v689_v43, 4 }
 0x2dc   :  { %v2367_v6 = vpop.eup %2062 }
 0x2dd   :  { %v485_v54 = vsel %vm346_vm3, %v2367_v6, 0.0 }
 0x2de   :  { %486 = vadd.xlane.f32.xlu0 %v485_v54  ;;  %v2126_v54 = vmov 1934713408  }
 0x2e1   :  { %v382_v52 = vpop.xlane.xlu0 %381 }
 0x2e2   :  { %v406_v53 = vsub.f32 %v2290_v24, %v382_v52  ;;  %v592_v24 = vrot.slane %v1992_v60, 4  ;;  %v619_v52 = vunpack.c.l.s4 %v2126_v54 }
 0x2e4   :  { %v433_v59 = vmul.f32 1.442695, %v406_v53  ;;  %v593_v7 = vsel %vm566_vm4, %v2007_v51, %v592_v24 }
 0x2e6   :  { %2064 = vpow2.f32 %v433_v59 }
 0x2e9   :  { %v2022_v12 = vpop.permute.xlu1 %2021  ;;  %v394_v15 = vpop.xlane.xlu0 %393 }
 0x2ea   :  { %v2024_v18 = vunpack.i.h.bf16 %v2022_v12  ;;  %v2023_v17 = vunpack.i.l.bf16 %v2022_v12  ;;  %v410_v19 = vsub.f32 %v2295_v29, %v394_v15  ;;  %v2006_v29 = vunpack.i.l.bf16 %v2204_v28 }
 0x2eb   :  { %v573_v28 = vperm.slane %v567_v26, %v2378_v8  ;;  %v2411_v15 = vunpack.c.0.s8 %v619_v52 }
 0x2ec   :  { %v2387_v33 = vpop.eup %2064  ;;  %v578_v27 = vrot.slane %v2024_v18, 4  ;;  %v581_v30 = vsel %vm566_vm4, %v2024_v18, %v580_v16  ;;  %v690_v31 = vrot.slane %v2023_v17, 4  ;;  %v441_v35 = vmul.f32 1.442695, %v410_v19 }
 0x2ed   :  { %v476_v4 = vsel %vm346_vm3, %v2387_v33, 0.0  ;;  %v589_v45 = vperm.slane %v581_v30, %v2378_v8  ;;  %v693_v62 = vsel %vm566_vm4, %v2023_v17, %v692_v32  ;;  %v702_v48 = vrot.slane %v2006_v29, 4 }
 0x2ee   :  { %v579_v5 = vsel %vm566_vm4, %v578_v27, %v2029_v61  ;;  %v691_v55 = vsel %vm566_vm4, %v690_v31, %v2028_v25  ;;  %477 = vadd.xlane.f32.xlu2 %v476_v4  ;;  %2066 = vpow2.f32 %v441_v35  ;;  %v701_v59 = vperm.slane %v693_v62, %v2378_v8 }
 0x2ef   :  { %v585_v53 = vperm.slane %v579_v5, %v2378_v8  ;;  %v697_v50 = vperm.slane %v691_v55, %v2378_v8  ;;  %v705_v61 = vsel %vm566_vm4, %v2006_v29, %v704_v37  ;;  %v626_v63 = vrot.slane %v589_v45, 4 }
 0x2f0   :  { %v616_v1 = vrot.slane %v573_v28, 4  ;;  %v591_v25 = vsel %vm566_vm4, %v590_v47, %v1992_v60  ;;  %v703_v12 = vsel %vm566_vm4, %v702_v48, %v1991_v21  ;;  %v601_v19 = vperm.slane %v593_v7, %v2378_v8 }
 0x2f1   :  { %v614_v16 = vrot.slane %v585_v53, 4  ;;  %v726_v18 = vrot.slane %v697_v50, 4  ;;  %v2417_v24 = vperm.slane %v705_v61, %v2378_v8  ;;  %v629_v26 = vsel %vm566_vm4, %v589_v45, %v628_v11 }
 0x2f2   :  { %v738_v20 = vrot.slane %v701_v59, 4  ;;  %v617_v36 = vsel %vm566_vm4, %v585_v53, %v616_v1  ;;  %v627_v60 = vsel %vm566_vm4, %v626_v63, %v577_v42  ;;  %v729_v21 = vsel %vm566_vm4, %v697_v50, %v728_v2 }
 0x2f3   :  { %v597_v51 = vperm.slane %v591_v25, %v2378_v8  ;;  %v709_v27 = vperm.slane %v703_v12, %v2378_v8  ;;  %v615_v30 = vsel %vm566_vm4, %v614_v16, %v573_v28  ;;  %v2429_v31 = vperm.slane %v629_v26, %v2411_v15 }
 0x2f4   :  { %v2413_v17 = vpop.eup %2066  ;;  %v727_v29 = vsel %vm566_vm4, %v726_v18, %v685_v46  ;;  %v741_v32 = vsel %vm566_vm4, %v701_v59, %v740_v38  ;;  %v2434_v35 = vperm.slane %v617_v36, %v2411_v15  ;;  %v2437_v4 = vperm.slane %v627_v60, %v2411_v15 }
 0x2f5   :  { %v488_v13 = vsel %vm346_vm3, %v2413_v17, 0.0  ;;  %v2440_v37 = vperm.slane %v729_v21, %v2411_v15  ;;  %v739_v5 = vsel %vm566_vm4, %v738_v20, %v689_v43  ;;  %v604_v55 = vrot.slane %v2002_v57, 4 }
 0x2f6   :  { %489 = vadd.xlane.f32.xlu0 %v488_v13  ;;  %v716_v42 = vrot.slane %v2001_v58, 4  ;;  %v652_v45 = vrot.slane %v601_v19, 4  ;;  %v764_v62 = vrot.slane %v2417_v24, 4  ;;  %v640_v28 = vrot.slane %v597_v51, 4 }
 0x2f7   :  { %v752_v46 = vrot.slane %v709_v27, 4  ;;  %v2449_v47 = vperm.slane %v615_v30, %v2411_v15  ;;  %v733_v48 = vperm.slane %v727_v29, %v2411_v15  ;;  %v2453_v52 = vperm.slane %v739_v5, %v2411_v15 }
 0x2f8   :  { %v2456_v43 = vperm.slane %v741_v32, %v2411_v15  ;;  %v668_v59 = vrot.slane %v2434_v35, 4  ;;  %v672_v11 = vrot.slane %v2437_v4, 4  ;;  %v676_v7 = vrot.slane %v2429_v31, 4 }
 0x2f9   :  { %v780_v61 = vrot.slane %v2440_v37, 4  ;;  %v664_v25 = vrot.slane %v2449_v47, 4  ;;  %v776_v12 = vrot.slane %v733_v48, 4  ;;  %v784_v26 = vrot.slane %v2453_v52, 4 }
 0x2fa   :  { %v788_v20 = vrot.slane %v2456_v43, 4 }
 0x2fc   :  { %v2032_v54 = vpop.permute.xlu0 %2031 }
 0x2fd   :  { %v2034_v53 = vunpack.i.h.bf16 %v2032_v54  ;;  %v2033_v50 = vunpack.i.l.bf16 %v2032_v54 }
 0x2ff   :  { %v602_v63 = vrot.slane %v2034_v53, 4  ;;  %v605_v1 = vsel %vm566_vm4, %v2034_v53, %v604_v55  ;;  %v714_v2 = vrot.slane %v2033_v50, 4  ;;  %v717_v38 = vsel %vm566_vm4, %v2033_v50, %v716_v42 }
 0x300   :  { %v613_v16 = vperm.slane %v605_v1, %v2378_v8  ;;  %v725_v18 = vperm.slane %v717_v38, %v2378_v8 }
 0x301   :  { %v603_v36 = vsel %vm566_vm4, %v602_v63, %v2002_v57  ;;  %v715_v60 = vsel %vm566_vm4, %v714_v2, %v2001_v58 }
 0x302   :  { %v609_v21 = vperm.slane %v603_v36, %v2378_v8  ;;  %v650_v13 = vrot.slane %v613_v16, 4  ;;  %v653_v30 = vsel %vm566_vm4, %v613_v16, %v652_v45  ;;  %v721_v29 = vperm.slane %v715_v60, %v2378_v8  ;;  %v376_v32 = vpop.xlane.xlu2 %375 }
 0x303   :  { %v2479_v5 = vperm.slane %v653_v30, %v2411_v15  ;;  %v762_v55 = vrot.slane %v725_v18, 4  ;;  %v765_v42 = vsel %vm566_vm4, %v725_v18, %v764_v62  ;;  %v404_v57 = vsub.f32 %v2302_v39, %v376_v32 }
 0x304   :  { %v638_v54 = vrot.slane %v609_v21, 4  ;;  %v641_v14 = vsel %vm566_vm4, %v609_v21, %v640_v28  ;;  %v651_v58 = vsel %vm566_vm4, %v650_v13, %v601_v19  ;;  %v750_v53 = vrot.slane %v721_v29, 4 }
 0x305   :  { %v649_v50 = vperm.slane %v641_v14, %v2411_v15  ;;  %v657_v45 = vperm.slane %v651_v58, %v2411_v15  ;;  %v674_v63 = vrot.slane %v2479_v5, 4  ;;  %v2490_v1 = vsel %vm566_vm4, %v2479_v5, %v676_v7 }
 0x306   :  { %v639_v62 = vsel %vm566_vm4, %v638_v54, %v597_v51  ;;  %v751_v39 = vsel %vm566_vm4, %v750_v53, %v709_v27  ;;  %v753_v2 = vsel %vm566_vm4, %v721_v29, %v752_v46  ;;  %v763_v19 = vsel %vm566_vm4, %v762_v55, %v2417_v24 }
 0x307   :  { %v645_v28 = vperm.slane %v639_v62, %v2411_v15  ;;  %v666_v38 = vrot.slane %v649_v50, 4  ;;  %v670_v16 = vrot.slane %v657_v45, 4  ;;  %v757_v18 = vperm.slane %v751_v39, %v2411_v15 }
 0x308   :  { %v761_v36 = vperm.slane %v753_v2, %v2411_v15  ;;  %v769_v7 = vperm.slane %v763_v19, %v2411_v15  ;;  %v773_v60 = vperm.slane %v765_v42, %v2411_v15  ;;  %v826_v51 = vrot.slane %v2490_v1, 4 }
 0x309   :  { %v429_v27 = vmul.f32 1.442695, %v404_v57  ;;  %v774_v21 = vrot.slane %v757_v18, 4  ;;  %v2504_v46 = vsel %vm566_vm4, %v757_v18, %v776_v12  ;;  %v662_v24 = vrot.slane %v645_v28, 4 }
 0x30a   :  { %v778_v13 = vrot.slane %v761_v36, 4  ;;  %v782_v30 = vrot.slane %v769_v7, 4  ;;  %v786_v29 = vrot.slane %v773_v60, 4  ;;  %v2507_v32 = vsel %vm566_vm4, %v773_v60, %v788_v20 }
 0x30b   :  { %v938_v5 = vrot.slane %v2507_v32, 4  ;;  %2068 = vpow2.f32 %v429_v27  ;;  %v2511_v55 = vsel %vm566_vm4, %v774_v21, %v733_v48  ;;  %v2514_v42 = vsel %vm566_vm4, %v761_v36, %v780_v61 }
 0x30c   :  { %v779_v12 = vsel %vm566_vm4, %v778_v13, %v2440_v37  ;;  %v2520_v57 = vsel %vm566_vm4, %v782_v30, %v2453_v52  ;;  %v2523_v54 = vsel %vm566_vm4, %v769_v7, %v784_v26  ;;  %v2527_v20 = vsel %vm566_vm4, %v786_v29, %v2456_v43 }
 0x30d   :  { %v902_v14 = vrot.slane %v779_v12, 4  ;;  %v904_v48 = vrot.slane %v2511_v55, 4  ;;  %v914_v61 = vrot.slane %v2514_v42, 4  ;;  %v916_v58 = vrot.slane %v2504_v46, 4 }
 0x30e   :  { %v926_v37 = vrot.slane %v2527_v20, 4  ;;  %v928_v53 = vrot.slane %v2520_v57, 4  ;;  %v939_v52 = vsel %vm566_vm4, %v938_v5, %v2523_v54  ;;  %v940_v26 = vrot.slane %v2523_v54, 4 }
 0x30f   :  { %v903_v43 = vsel %vm566_vm4, %v902_v14, %v2511_v55  ;;  %v915_v62 = vsel %vm566_vm4, %v914_v61, %v2504_v46  ;;  %v945_v39 = vperm.slane %v939_v52, %v2378_v8  ;;  %v2544_v2 = vsel %vm566_vm4, %v662_v24, %v2449_v47 }
 0x310   :  { %v457_v19 = vpop.xlane.xlu2 %456  ;;  %v909_v18 = vperm.slane %v903_v43, %v2378_v8  ;;  %v921_v36 = vperm.slane %v915_v62, %v2378_v8  ;;  %v927_v7 = vsel %vm566_vm4, %v926_v37, %v2520_v57  ;;  %v2553_v60 = vsel %vm566_vm4, %v645_v28, %v664_v25 }
 0x311   :  { %v2555_v27 = vpop.eup %2068  ;;  %2070 = vrcp.f32 %v457_v19  ;;  %v933_v21 = vperm.slane %v927_v7, %v2378_v8  ;;  %v974_v46 = vrot.slane %v945_v39, 4  ;;  %v2560_v24 = vsel %vm566_vm4, %v666_v38, %v2434_v35 }
 0x312   :  { %v470_v13 = vsel %vm346_vm3, %v2555_v27, 0.0  ;;  %v950_v30 = vrot.slane %v921_v36, 4  ;;  %v2567_v47 = vsel %vm566_vm4, %v649_v50, %v668_v59  ;;  %v2571_v25 = vsel %vm566_vm4, %v670_v16, %v2437_v4 }
 0x313   :  { %471 = vadd.xlane.f32.xlu1 %v470_v13  ;;  %v975_v28 = vsel %vm566_vm4, %v974_v46, %v933_v21  ;;  %v2577_v38 = vsel %vm566_vm4, %v657_v45, %v672_v11  ;;  %v2581_v29 = vsel %vm566_vm4, %v674_v63, %v2429_v31  ;;  %v790_v35 = vrot.slane %v2560_v24, 4 }
 0x314   :  { %v951_v59 = vsel %vm566_vm4, %v950_v30, %v909_v18  ;;  %v981_v50 = vperm.slane %v975_v28, %v2411_v15  ;;  %v792_v16 = vrot.slane %v2544_v2, 4  ;;  %v802_v5 = vrot.slane %v2567_v47, 4 }
 0x315   :  { %v957_v55 = vperm.slane %v951_v59, %v2411_v15  ;;  %v791_v4 = vsel %vm566_vm4, %v790_v35, %v2544_v2  ;;  %v804_v11 = vrot.slane %v2553_v60, 4  ;;  %v814_v31 = vrot.slane %v2581_v29, 4 }
 0x316   :  { %v998_v45 = vrot.slane %v981_v50, 4  ;;  %v797_v63 = vperm.slane %v791_v4, %v2378_v8  ;;  %v803_v14 = vsel %vm566_vm4, %v802_v5, %v2553_v60  ;;  %v816_v61 = vrot.slane %v2571_v25, 4 }
 0x317   :  { %v2597_v37 = vpop.eup %2070  ;;  %v809_v52 = vperm.slane %v803_v14, %v2378_v8  ;;  %v815_v43 = vsel %vm566_vm4, %v814_v31, %v2571_v25  ;;  %v827_v62 = vsel %vm566_vm4, %v826_v51, %v2577_v38  ;;  %v828_v19 = vrot.slane %v2577_v38, 4 }
 0x318   :  { %v999_v7 = vsel %vm566_vm4, %v998_v45, %v957_v55  ;;  %v821_v46 = vperm.slane %v815_v43, %v2378_v8  ;;  %v833_v13 = vperm.slane %v827_v62, %v2378_v8  ;;  %v1000_v30 = vrot.slane %v957_v55, 4 }
 0x319   :  { %1034 = vmatpush.msra.mxu1 %v999_v7  ;;  %v838_v28 = vrot.slane %v809_v52, 4  ;;  %v952_v35 = vrot.slane %v909_v18, 4  ;;  %v976_v59 = vrot.slane %v933_v21, 4  ;;  %v905_v5 = vsel %vm566_vm4, %v779_v12, %v904_v48 }
 0x31a   :  { %v862_v4 = vrot.slane %v833_v13, 4  ;;  %v1001_v31 = vsel %vm566_vm4, %v981_v50, %v1000_v30  ;;  %v913_v51 = vperm.slane %v905_v5, %v2378_v8  ;;  %v917_v14 = vsel %vm566_vm4, %v2514_v42, %v916_v58 }
 0x31b   :  { %v839_v45 = vsel %vm566_vm4, %v838_v28, %v797_v63  ;;  %1063 = vmatpush.msra.mxu2 %v1001_v31  ;;  %v953_v43 = vsel %vm566_vm4, %v921_v36, %v952_v35  ;;  %v977_v55 = vsel %vm566_vm4, %v945_v39, %v976_v59  ;;  %v925_v18 = vperm.slane %v917_v14, %v2378_v8 }
 0x31c   :  { %v845_v21 = vperm.slane %v839_v45, %v2411_v15  ;;  %v863_v12 = vsel %vm566_vm4, %v862_v4, %v821_v46  ;;  %v961_v48 = vperm.slane %v953_v43, %v2411_v15  ;;  %v985_v50 = vperm.slane %v977_v55, %v2411_v15  ;;  %v460_v4 = vpop.xlane.xlu2 %459 }
 0x31d   :  { %v869_v62 = vperm.slane %v863_v12, %v2411_v15  ;;  %v929_v42 = vsel %vm566_vm4, %v2527_v20, %v928_v53  ;;  %v941_v58 = vsel %vm566_vm4, %v2507_v32, %v940_v26  ;;  %v962_v39 = vrot.slane %v925_v18, 4  ;;  %v445_v32 = vpop.xlane.xlu1 %444 }
 0x31e   :  { %v1002_v36 = vrot.slane %v985_v50, 4  ;;  %v937_v7 = vperm.slane %v929_v42, %v2378_v8  ;;  %v949_v30 = vperm.slane %v941_v58, %v2378_v8  ;;  %v964_v28 = vrot.slane %v913_v51, 4 }
 0x31f   :  { %v886_v35 = vrot.slane %v869_v62, 4  ;;  %v963_v59 = vsel %vm566_vm4, %v962_v39, %v913_v51  ;;  %v888_v5 = vrot.slane %v845_v21, 4  ;;  %v840_v57 = vrot.slane %v797_v63, 4 }
 0x320   :  { %v1003_v20 = vsel %vm566_vm4, %v1002_v36, %v961_v48  ;;  %v969_v54 = vperm.slane %v963_v59, %v2411_v15  ;;  %v986_v53 = vrot.slane %v949_v30, 4  ;;  %v988_v31 = vrot.slane %v937_v7, 4 }
 0x321   :  { %v887_v26 = vsel %vm566_vm4, %v886_v35, %v845_v21  ;;  %1092 = vmatpush.msrb.mxu3 %v1003_v20  ;;  %v889_v14 = vsel %vm566_vm4, %v869_v62, %v888_v5  ;;  %v841_v45 = vsel %vm566_vm4, %v809_v52, %v840_v57  ;;  %v864_v43 = vrot.slane %v821_v46, 4 }
 0x322   :  { %1035 = vmatpush.msra.mxu1 %v887_v26  ;;  %v987_v51 = vsel %vm566_vm4, %v986_v53, %v937_v7  ;;  %1064 = vmatpush.msra.mxu2 %v889_v14  ;;  %v849_v63 = vperm.slane %v841_v45, %v2411_v15  ;;  %v1004_v55 = vrot.slane %v961_v48, 4  ;;  %2072 = vrcp.f32 %v460_v4 }
 0x323   :  { %v993_v12 = vperm.slane %v987_v51, %v2411_v15  ;;  %v865_v42 = vsel %vm566_vm4, %v833_v13, %v864_v43  ;;  %2074 = vrcp.f32 %v445_v32  ;;  %v793_v21 = vsel %vm566_vm4, %v2560_v24, %v792_v16 }
 0x324   :  { %v873_v52 = vperm.slane %v865_v42, %v2411_v15  ;;  %v1005_v46 = vsel %vm566_vm4, %v985_v50, %v1004_v55  ;;  %v801_v62 = vperm.slane %v793_v21, %v2378_v8  ;;  %v805_v48 = vsel %vm566_vm4, %v2567_v47, %v804_v11 }
 0x325   :  { %v1006_v58 = vrot.slane %v993_v12, 4  ;;  %1121 = vmatpush.msrb.mxu0 %v1005_v46  ;;  %v813_v13 = vperm.slane %v805_v48, %v2378_v8  ;;  %v817_v2 = vsel %vm566_vm4, %v2581_v29, %v816_v61  ;;  %v829_v24 = vsel %vm566_vm4, %v2490_v1, %v828_v19 }
 0x326   :  { %v890_v16 = vrot.slane %v873_v52, 4  ;;  %v825_v60 = vperm.slane %v817_v2, %v2378_v8  ;;  %v837_v50 = vperm.slane %v829_v24, %v2378_v8  ;;  %v1008_v47 = vrot.slane %v969_v54, 4 }
 0x327   :  { %v1007_v11 = vsel %vm566_vm4, %v1006_v58, %v969_v54  ;;  %v850_v39 = vrot.slane %v813_v13, 4  ;;  %v965_v36 = vsel %vm566_vm4, %v925_v18, %v964_v28  ;;  %v989_v25 = vsel %vm566_vm4, %v949_v30, %v988_v31  ;;  %v451_v7 = vpop.xlane.xlu0 %450  ;;  %v454_v28 = vpop.xlane.xlu2 %453 }
 0x328   :  { %v2073_v29 = vpop.eup %2072  ;;  %1150 = vmatpush.msrb.mxu1 %v1007_v11  ;;  %v891_v38 = vsel %vm566_vm4, %v890_v16, %v849_v63  ;;  %v874_v61 = vrot.slane %v837_v50, 4  ;;  %v1009_v1 = vsel %vm566_vm4, %v993_v12, %v1008_v47  ;;  %v973_v19 = vperm.slane %v965_v36, %v2411_v15 }
 0x329   :  { %v2075_v35 = vpop.eup %2074  ;;  %1093 = vmatpush.msrb.mxu3 %v891_v38  ;;  %v851_v59 = vsel %vm566_vm4, %v850_v39, %v801_v62  ;;  %1179 = vmatpush.msrb.mxu2 %v1009_v1  ;;  %v997_v5 = vperm.slane %v989_v25, %v2411_v15  ;;  %v892_v18 = vrot.slane %v849_v63, 4  ;;  %v511_v30 = vmul.f32 %v2597_v37, %v2309_v49 }
 0x32a   :  { %v857_v57 = vperm.slane %v851_v59, %v2411_v15  ;;  %v875_v4 = vsel %vm566_vm4, %v874_v61, %v825_v60  ;;  %v852_v20 = vrot.slane %v801_v62, 4  ;;  %v876_v54 = vrot.slane %v825_v60, 4 }
 0x32b   :  { %v881_v53 = vperm.slane %v875_v4, %v2411_v15  ;;  %v1010_v31 = vrot.slane %v997_v5, 4  ;;  %v893_v32 = vsel %vm566_vm4, %v873_v52, %v892_v18  ;;  %1948 = vmatmul.msk.f32.vlgmr.msrb.gmra.mxu3 %vm346_vm3, %v511_v30  ;;  %v1012_v26 = vrot.slane %v973_v19, 4 }
 0x32c   :  { %1122 = vmatpush.msrb.mxu0 %v893_v32  ;;  %v896_v14 = vrot.slane %v857_v57, 4  ;;  %v853_v45 = vsel %vm566_vm4, %v813_v13, %v852_v20  ;;  %v877_v49 = vsel %vm566_vm4, %v837_v50, %v876_v54  ;;  %v507_v42 = vmul.f32 %v2075_v35, %v2317_v0 }
 0x32d   :  { %v894_v37 = vrot.slane %v881_v53, 4  ;;  %v1011_v43 = vsel %vm566_vm4, %v1010_v31, %v973_v19  ;;  %v861_v51 = vperm.slane %v853_v45, %v2411_v15  ;;  %v885_v63 = vperm.slane %v877_v49, %v2411_v15 }
 0x32e   :  { %1208 = vmatpush.msra.mxu3 %v1011_v43  ;;  %v897_v55 = vsel %vm566_vm4, %v881_v53, %v896_v14  ;;  %v1013_v12 = vsel %vm566_vm4, %v997_v5, %v1012_v26  ;;  %v512_v21 = vmul.f32 %v2073_v29, %v2314_v56  ;;  %2076 = vrcp.f32 %v451_v7  ;;  %1944 = vmatmul.msk.f32.vlgmr.msra.gmra.mxu1 %vm346_vm3, %v507_v42 }
 0x32f   :  { %v895_v52 = vsel %vm566_vm4, %v894_v37, %v857_v57  ;;  %1180 = vmatpush.msrb.mxu2 %v897_v55  ;;  %v898_v46 = vrot.slane %v885_v63, 4  ;;  %1237 = vmatpush.msra.mxu0 %v1013_v12  ;;  %v900_v62 = vrot.slane %v861_v51, 4  ;;  %v463_v48 = vpop.xlane.xlu0 %462  ;;  %v466_v56 = vpop.xlane.xlu2 %465 }
 0x330   :  { %1151 = vmatpush.msrb.mxu1 %v895_v52  ;;  %2078 = vrcp.f32 %v463_v48 }
 0x331   :  { %v899_v58 = vsel %vm566_vm4, %v898_v46, %v861_v51  ;;  %v901_v13 = vsel %vm566_vm4, %v885_v63, %v900_v62  ;;  %v481_v2 = vpop.xlane.xlu1 %480 }
 0x332   :  { %1209 = vmatpush.msra.mxu3 %v899_v58  ;;  %1238 = vmatpush.msra.mxu0 %v901_v13  ;;  %2080 = vrcp.f32 %v481_v2 }
 0x333   :  { %1949 = vmatmul.msk.f32.gmra.mxu3 %vm346_vm3, %v512_v21  ;;  %2082 = vrcp.f32 %v454_v28 }
 0x334   :  { %v2077_v0 = vpop.eup %2076  ;;  %2084 = vrcp.f32 %v466_v56 }
 0x335   :  { %v509_v24 = vmul.f32 %v2077_v0, %v2329_v9 }
 0x336   :  { %v2079_v16 = vpop.eup %2078 }
 0x337   :  { %v448_v60 = vpop.xlane.xlu0 %447  ;;  %1946 = vmatmul.msk.f32.vlgmr.msra.gmra.mxu2 %vm346_vm3, %v509_v24  ;;  %v513_v47 = vmul.f32 %v2079_v16, %v2339_v22 }
 0x338   :  { %v2081_v50 = vpop.eup %2080  ;;  %2086 = vrcp.f32 %v448_v60 }
 0x339   :  { %v519_v11 = vmul.f32 %v2081_v50, %v2345_v23  ;;  %1950 = vmatmul.msk.f32.vlgmr.msrb.gmra.mxu0 %vm346_vm3, %v513_v47  ;;  %v2083_v39 = vpop.eup %2082  ;;  %v469_v36 = vpop.xlane.xlu2 %468 }
 0x33a   :  { %v2085_v25 = vpop.eup %2084  ;;  %2088 = vrcp.f32 %v469_v36  ;;  %v510_v9 = vmul.f32 %v2083_v39, %v2324_v3 }
 0x33b   :  { %1956 = vmatmul.msk.f32.vlgmr.msra.gmra.mxu3 %vm346_vm3, %v519_v11  ;;  %v514_v22 = vmul.f32 %v2085_v25, %v2331_v10 }
 0x33e   :  { %v2087_v7 = vpop.eup %2086 }
 0x33f   :  { %v475_v29 = vpop.xlane.xlu0 %474  ;;  %v508_v38 = vmul.f32 %v2087_v7, %v2349_v34  ;;  %1947 = vmatmul.msk.f32.gmra.mxu2 %vm346_vm3, %v510_v9 }
 0x340   :  { %2090 = vrcp.f32 %v475_v29  ;;  %v2089_v61 = vpop.eup %2088 }
 0x341   :  { %v484_v23 = vpop.xlane.xlu1 %483  ;;  %1945 = vmatmul.msk.f32.gmra.mxu1 %vm346_vm3, %v508_v38  ;;  %1951 = vmatmul.msk.f32.gmra.mxu0 %vm346_vm3, %v514_v22  ;;  %v515_v19 = vmul.f32 %v2089_v61, %v2354_v40 }
 0x342   :  { %2092 = vrcp.f32 %v484_v23 }
 0x346   :  { %v2091_v1 = vpop.eup %2090 }
 0x347   :  { %v517_v3 = vmul.f32 %v2091_v1, %v2358_v44 }
 0x348   :  { %v2093_v35 = vpop.eup %2092 }
 0x349   :  { %1952 = vmatmul.msk.f32.vlgmr.msrb.gmra.mxu1 %vm346_vm3, %v515_v19  ;;  %1954 = vmatmul.msk.f32.vlgmr.msrb.gmra.mxu2 %vm346_vm3, %v517_v3  ;;  %v520_v34 = vmul.f32 %v2093_v35, %v2362_v41 }
 0x34b   :  { %1957 = vmatmul.msk.f32.gmra.mxu3 %vm346_vm3, %v520_v34 }
 0x351   :  { %v487_v10 = vpop.xlane.xlu0 %486 }
 0x352   :  { %2094 = vrcp.f32 %v487_v10 }
 0x358   :  { %v2095_v59 = vpop.eup %2094 }
 0x359   :  { %v521_v5 = vmul.f32 %v2095_v59, %v2367_v6 }
 0x35b   :  { %1958 = vmatmul.msk.f32.vlgmr.msra.gmra.mxu0 %vm346_vm3, %v521_v5 }
 0x361   :  { %v478_v18 = vpop.xlane.xlu2 %477 }
 0x362   :  { %2096 = vrcp.f32 %v478_v18 }
 0x368   :  { %v2097_v40 = vpop.eup %2096 }
 0x369   :  { %v518_v44 = vmul.f32 %v2097_v40, %v2387_v33  ;;  %v490_v30 = vpop.xlane.xlu0 %489 }
 0x36a   :  { %2098 = vrcp.f32 %v490_v30 }
 0x36b   :  { %1955 = vmatmul.msk.f32.gmra.mxu2 %vm346_vm3, %v518_v44 }
 0x370   :  { %v2099_v28 = vpop.eup %2098 }
 0x371   :  { %v522_v41 = vmul.f32 %v2099_v28, %v2413_v17 }
 0x373   :  { %1959 = vmatmul.msk.f32.gmra.mxu0 %vm346_vm3, %v522_v41 }
 0x386   :  { %v472_v57 = vpop.xlane.xlu1 %471 }
 0x387   :  { %2100 = vrcp.f32 %v472_v57 }
 0x38d   :  { %v2101_v4 = vpop.eup %2100 }
 0x38e   :  { %v516_v6 = vmul.f32 %v2101_v4, %v2555_v27 }
 0x390   :  { %1953 = vmatmul.msk.f32.gmra.mxu1 %vm346_vm3, %v516_v6 }
 0x3ab   :  { %v1037_v20 = vpop.f32.mrf.mxu1 }
 0x3ac   :  { %v1248_v26 = vrot.slane %v1037_v20, 4 }
 0x3ae   :  { %v1095_v54 = vpop.f32.mrf.mxu3 }
 0x3af   :  { %v1246_v17 = vrot.slane %v1095_v54, 4  ;;  %v1249_v43 = vsel %vm566_vm4, %v1095_v54, %v1248_v26 }
 0x3b0   :  { %v1257_v12 = vperm.slane %v1249_v43, %v2378_v8 }
 0x3b1   :  { %v1247_v51 = vsel %vm566_vm4, %v1246_v17, %v1037_v20 }
 0x3b2   :  { %v1253_v46 = vperm.slane %v1247_v51, %v2378_v8  ;;  %v1308_v13 = vrot.slane %v1257_v12, 4 }
 0x3b4   :  { %v1296_v0 = vrot.slane %v1253_v46, 4 }
 0x3b6   :  { %v1124_v31 = vpop.f32.mrf.mxu0  ;;  %v2723_v32 = vpop.f32.mrf.mxu3 }
 0x3b7   :  { %v1258_v45 = vrot.slane %v1124_v31, 4 }
 0x3ba   :  { %v1066_v53 = vpop.f32.mrf.mxu2 }
 0x3bb   :  { %v1260_v14 = vrot.slane %v1066_v53, 4  ;;  %v1259_v63 = vsel %vm566_vm4, %v1258_v45, %v1066_v53 }
 0x3bc   :  { %v1265_v62 = vperm.slane %v1259_v63, %v2378_v8 }
 0x3bd   :  { %v1261_v27 = vsel %vm566_vm4, %v1124_v31, %v1260_v14 }
 0x3be   :  { %v2721_v33 = vpop.f32.mrf.mxu1  ;;  %v1269_v42 = vperm.slane %v1261_v27, %v2378_v8  ;;  %v2733_v21 = vpop.f32.mrf.mxu0  ;;  %v1294_v16 = vrot.slane %v1265_v62, 4  ;;  %v1297_v47 = vsel %vm566_vm4, %v1265_v62, %v1296_v0 }
 0x3bf   :  { %v1211_v52 = vpop.f32.mrf.mxu3  ;;  %v1305_v22 = vperm.slane %v1297_v47, %v2411_v15 }
 0x3c0   :  { %v1270_v48 = vrot.slane %v1211_v52, 4  ;;  %v1306_v2 = vrot.slane %v1269_v42, 4  ;;  %v1309_v60 = vsel %vm566_vm4, %v1269_v42, %v1308_v13  ;;  %v1295_v38 = vsel %vm566_vm4, %v1294_v16, %v1253_v46 }
 0x3c1   :  { %v1317_v7 = vperm.slane %v1309_v60, %v2411_v15  ;;  %v1301_v59 = vperm.slane %v1295_v38, %v2411_v15  ;;  %v1348_v40 = vrot.slane %v1305_v22, 4 }
 0x3c2   :  { %v2725_v49 = vpop.f32.mrf.mxu2  ;;  %v1307_v39 = vsel %vm566_vm4, %v1306_v2, %v1257_v12 }
 0x3c3   :  { %v1313_v1 = vperm.slane %v1307_v39, %v2411_v15  ;;  %v1356_v5 = vrot.slane %v1317_v7, 4  ;;  %v1344_v45 = vrot.slane %v1301_v59, 4 }
 0x3c5   :  { %v1352_v20 = vrot.slane %v1313_v1, 4 }
 0x3c6   :  { %v1153_v37 = vpop.f32.mrf.mxu1 }
 0x3c7   :  { %v1272_v55 = vrot.slane %v1153_v37, 4  ;;  %v1271_v24 = vsel %vm566_vm4, %v1270_v48, %v1153_v37 }
 0x3c8   :  { %v1277_v36 = vperm.slane %v1271_v24, %v2378_v8 }
 0x3c9   :  { %v1273_v58 = vsel %vm566_vm4, %v1211_v52, %v1272_v55 }
 0x3ca   :  { %v1281_v50 = vperm.slane %v1273_v58, %v2378_v8  ;;  %v1320_v3 = vrot.slane %v1277_v36, 4 }
 0x3cc   :  { %v1182_v56 = vpop.f32.mrf.mxu2  ;;  %v1332_v23 = vrot.slane %v1281_v50, 4 }
 0x3cd   :  { %v1284_v11 = vrot.slane %v1182_v56, 4 }
 0x3d8   :  { %v1240_v25 = vpop.f32.mrf.mxu0 }
 0x3d9   :  { %v1282_v9 = vrot.slane %v1240_v25, 4  ;;  %v1285_v29 = vsel %vm566_vm4, %v1240_v25, %v1284_v11 }
 0x3da   :  { %v1293_v61 = vperm.slane %v1285_v29, %v2378_v8 }
 0x3db   :  { %v1283_v19 = vsel %vm566_vm4, %v1282_v9, %v1182_v56 }
 0x3dc   :  { %v1289_v35 = vperm.slane %v1283_v19, %v2378_v8  ;;  %v1330_v34 = vrot.slane %v1293_v61, 4  ;;  %v1333_v10 = vsel %vm566_vm4, %v1293_v61, %v1332_v23 }
 0x3dd   :  { %v1341_v18 = vperm.slane %v1333_v10, %v2411_v15 }
 0x3de   :  { %v1318_v44 = vrot.slane %v1289_v35, 4  ;;  %v1321_v30 = vsel %vm566_vm4, %v1289_v35, %v1320_v3  ;;  %v1331_v28 = vsel %vm566_vm4, %v1330_v34, %v1281_v50 }
 0x3df   :  { %v1329_v41 = vperm.slane %v1321_v30, %v2411_v15  ;;  %v1337_v57 = vperm.slane %v1331_v28, %v2411_v15  ;;  %v1354_v4 = vrot.slane %v1341_v18, 4  ;;  %v1357_v6 = vsel %vm566_vm4, %v1341_v18, %v1356_v5 }
 0x3e0   :  { %v1319_v54 = vsel %vm566_vm4, %v1318_v44, %v1277_v36  ;;  %v1506_v53 = vrot.slane %v1357_v6, 4 }
 0x3e1   :  { %v1325_v31 = vperm.slane %v1319_v54, %v2411_v15  ;;  %v1346_v26 = vrot.slane %v1329_v41, 4  ;;  %v1349_v14 = vsel %vm566_vm4, %v1329_v41, %v1348_v40  ;;  %v1350_v17 = vrot.slane %v1337_v57, 4 }
 0x3e2   :  { %v1353_v37 = vsel %vm566_vm4, %v1337_v57, %v1352_v20  ;;  %v1355_v43 = vsel %vm566_vm4, %v1354_v4, %v1317_v7  ;;  %v1482_v27 = vrot.slane %v1349_v14, 4 }
 0x3e3   :  { %v1342_v51 = vrot.slane %v1325_v31, 4  ;;  %v1347_v63 = vsel %vm566_vm4, %v1346_v26, %v1305_v22  ;;  %v1351_v55 = vsel %vm566_vm4, %v1350_v17, %v1313_v1  ;;  %v1494_v12 = vrot.slane %v1355_v43, 4 }
 0x3e4   :  { %v1508_v42 = vrot.slane %v1353_v37, 4  ;;  %v1345_v52 = vsel %vm566_vm4, %v1325_v31, %v1344_v45  ;;  %v1470_v46 = vrot.slane %v1347_v63, 4  ;;  %v1507_v62 = vsel %vm566_vm4, %v1506_v53, %v1353_v37 }
 0x3e5   :  { %v1343_v48 = vsel %vm566_vm4, %v1342_v51, %v1301_v59  ;;  %v1483_v58 = vsel %vm566_vm4, %v1482_v27, %v1345_v52  ;;  %v1484_v13 = vrot.slane %v1345_v52, 4  ;;  %v1495_v2 = vsel %vm566_vm4, %v1494_v12, %v1351_v55 }
 0x3e6   :  { %v1471_v56 = vsel %vm566_vm4, %v1470_v46, %v1343_v48  ;;  %v1472_v0 = vrot.slane %v1343_v48, 4  ;;  %v1489_v24 = vperm.slane %v1483_v58, %v2378_v8  ;;  %v1501_v16 = vperm.slane %v1495_v2, %v2378_v8 }
 0x3e7   :  { %v1477_v60 = vperm.slane %v1471_v56, %v2378_v8  ;;  %v1513_v50 = vperm.slane %v1507_v62, %v2378_v8  ;;  %v1485_v47 = vsel %vm566_vm4, %v1349_v14, %v1484_v13  ;;  %v1496_v11 = vrot.slane %v1351_v55, 4 }
 0x3e8   :  { %v1544_v39 = vrot.slane %v1501_v16, 4  ;;  %v1518_v36 = vrot.slane %v1489_v24, 4  ;;  %v1473_v25 = vsel %vm566_vm4, %v1347_v63, %v1472_v0  ;;  %v1493_v7 = vperm.slane %v1485_v47, %v2378_v8 }
 0x3e9   :  { %v1520_v9 = vrot.slane %v1477_v60, 4  ;;  %v1542_v29 = vrot.slane %v1513_v50, 4  ;;  %v1481_v38 = vperm.slane %v1473_v25, %v2378_v8  ;;  %v1497_v22 = vsel %vm566_vm4, %v1355_v43, %v1496_v11 }
 0x3ea   :  { %v1545_v23 = vsel %vm566_vm4, %v1513_v50, %v1544_v39  ;;  %v1519_v61 = vsel %vm566_vm4, %v1518_v36, %v1477_v60  ;;  %v1505_v1 = vperm.slane %v1497_v22, %v2378_v8  ;;  %v1509_v19 = vsel %vm566_vm4, %v1357_v6, %v1508_v42  ;;  %v1214_v22 = vpop.f32.mrf.mxu3 }
 0x3eb   :  { %v1521_v3 = vsel %vm566_vm4, %v1489_v24, %v1520_v9  ;;  %v1553_v35 = vperm.slane %v1545_v23, %v2411_v15  ;;  %v1525_v34 = vperm.slane %v1519_v61, %v2411_v15  ;;  %v1543_v10 = vsel %vm566_vm4, %v1542_v29, %v1501_v16 }
 0x3ec   :  { %v1529_v59 = vperm.slane %v1521_v3, %v2411_v15  ;;  %v1549_v5 = vperm.slane %v1543_v10, %v2411_v15  ;;  %v1517_v18 = vperm.slane %v1509_v19, %v2378_v8  ;;  %v1530_v40 = vrot.slane %v1493_v7, 4 }
 0x3ed   :  { %v1570_v44 = vrot.slane %v1553_v35, 4  ;;  %v1568_v30 = vrot.slane %v1525_v34, 4  ;;  %v1532_v28 = vrot.slane %v1481_v38, 4  ;;  %v1556_v41 = vrot.slane %v1505_v1, 4 }
 0x3ee   :  { %v1566_v57 = vrot.slane %v1549_v5, 4  ;;  %v1531_v4 = vsel %vm566_vm4, %v1530_v40, %v1481_v38  ;;  %v1554_v6 = vrot.slane %v1517_v18, 4  ;;  %v1572_v52 = vrot.slane %v1529_v59, 4  ;;  %v1185_v11 = vpop.f32.mrf.mxu2 }
 0x3ef   :  { %v1571_v20 = vsel %vm566_vm4, %v1570_v44, %v1529_v59  ;;  %v1569_v54 = vsel %vm566_vm4, %v1549_v5, %v1568_v30  ;;  %v1537_v53 = vperm.slane %v1531_v4, %v2411_v15  ;;  %v1533_v26 = vsel %vm566_vm4, %v1493_v7, %v1532_v28 }
 0x3f0   :  { %1704 = vrot.lane.b32.xlu1 %v1571_v20, %s2127_s12  ;;  %1696 = vrot.lane.b32.xlu2 %v1569_v54, %s2128_s13  ;;  %v1555_v31 = vsel %vm566_vm4, %v1554_v6, %v1505_v1  ;;  %v1557_v14 = vsel %vm566_vm4, %v1517_v18, %v1556_v41  ;;  %v2805_v43 = vsel %vm566_vm4, %v1566_v57, %v1525_v34  ;;  %v1370_v48 = vrot.slane %v2733_v21, 4  ;;  %v1243_v16 = vpop.f32.mrf.mxu0 }
 0x3f1   :  { %v1561_v17 = vperm.slane %v1555_v31, %v2411_v15  ;;  %v1576_v45 = vrot.slane %v1537_v53, 4  ;;  %v1565_v37 = vperm.slane %v1557_v14, %v2411_v15  ;;  %v1541_v51 = vperm.slane %v1533_v26, %v2411_v15 }
 0x3f2   :  { %v1573_v46 = vsel %vm566_vm4, %v1553_v35, %v1572_v52  ;;  %v1372_v58 = vrot.slane %v2725_v49, 4  ;;  %v1360_v13 = vrot.slane %v2721_v33, 4  ;;  %v1358_v2 = vrot.slane %v2723_v32, 4 }
 0x3f3   :  { %v1577_v27 = vsel %vm566_vm4, %v1561_v17, %v1576_v45  ;;  %v1578_v63 = vrot.slane %v1565_v37, 4  ;;  %v1574_v55 = vrot.slane %v1561_v17, 4  ;;  %v1580_v62 = vrot.slane %v1541_v51, 4 }
 0x3f4   :  { %1728 = vrot.lane.b32.xlu0 %v1577_v27, %s2129_s14  ;;  %v1371_v0 = vsel %vm566_vm4, %v1370_v48, %v2725_v49  ;;  %v1359_v24 = vsel %vm566_vm4, %v1358_v2, %v2721_v33  ;;  %v1361_v60 = vsel %vm566_vm4, %v2723_v32, %v1360_v13  ;;  %v1373_v50 = vsel %vm566_vm4, %v2733_v21, %v1372_v58 }
 0x3f5   :  { %v1579_v12 = vsel %vm566_vm4, %v1578_v63, %v1541_v51  ;;  %v1575_v42 = vsel %vm566_vm4, %v1574_v55, %v1537_v53  ;;  %v1581_v56 = vsel %vm566_vm4, %v1565_v37, %v1580_v62  ;;  %v1377_v47 = vperm.slane %v1371_v0, %v2378_v8 }
 0x3f6   :  { %v1365_v39 = vperm.slane %v1359_v24, %v2378_v8  ;;  %v1394_v36 = vrot.slane %v1243_v16, 4  ;;  %v1369_v49 = vperm.slane %v1361_v60, %v2378_v8  ;;  %v1381_v25 = vperm.slane %v1373_v50, %v2378_v8 }
 0x3f7   :  { %v1396_v7 = vrot.slane %v1185_v11, 4  ;;  %v1406_v9 = vrot.slane %v1377_v47, 4  ;;  %v1382_v19 = vrot.slane %v1214_v22, 4 }
 0x3f8   :  { %1736 = vrot.lane.b32.xlu1 %v1579_v12, %s2130_s15  ;;  %1720 = vrot.lane.b32.xlu2 %v1575_v42, %s2131_s16  ;;  %v1408_v33 = vrot.slane %v1365_v39, 4  ;;  %v1395_v29 = vsel %vm566_vm4, %v1394_v36, %v1185_v11  ;;  %v1420_v38 = vrot.slane %v1369_v49, 4  ;;  %v1418_v32 = vrot.slane %v1381_v25, 4 }
 0x3f9   :  { %v1397_v21 = vsel %vm566_vm4, %v1243_v16, %v1396_v7  ;;  %v1407_v23 = vsel %vm566_vm4, %v1406_v9, %v1365_v39  ;;  %v1401_v61 = vperm.slane %v1395_v29, %v2378_v8 }
 0x3fa   :  { %v1409_v1 = vsel %vm566_vm4, %v1377_v47, %v1408_v33  ;;  %v1419_v3 = vsel %vm566_vm4, %v1418_v32, %v1369_v49  ;;  %v1421_v35 = vsel %vm566_vm4, %v1381_v25, %v1420_v38  ;;  %v1405_v34 = vperm.slane %v1397_v21, %v2378_v8 }
 0x3fb   :  { %v1413_v59 = vperm.slane %v1407_v23, %v2411_v15  ;;  %v1417_v40 = vperm.slane %v1409_v1, %v2411_v15  ;;  %v1430_v44 = vrot.slane %v1401_v61, 4  ;;  %v1425_v28 = vperm.slane %v1419_v3, %v2411_v15 }
 0x3fc   :  { %1712 = vrot.lane.b32.xlu0 %v1573_v46, %s2132_s17  ;;  %v1429_v41 = vperm.slane %v1421_v35, %v2411_v15  ;;  %v1442_v4 = vrot.slane %v1405_v34, 4 }
 0x3fd   :  { %v1456_v53 = vrot.slane %v1413_v59, 4  ;;  %v1460_v26 = vrot.slane %v1417_v40, 4  ;;  %v1464_v55 = vrot.slane %v1425_v28, 4 }
 0x3fe   :  { %v1468_v12 = vrot.slane %v1429_v41, 4 }
 0x400   :  { %1744 = vrot.lane.b32.xlu2 %v1581_v56, %s2117_s2 }
 0x40d   :  { %v1156_v10 = vpop.f32.mrf.mxu1 }
 0x40e   :  { %v1383_v5 = vsel %vm566_vm4, %v1382_v19, %v1156_v10  ;;  %v1384_v18 = vrot.slane %v1156_v10, 4 }
 0x40f   :  { %v1389_v30 = vperm.slane %v1383_v5, %v2378_v8 }
 0x410   :  { %v1385_v57 = vsel %vm566_vm4, %v1214_v22, %v1384_v18 }
 0x411   :  { %v1393_v6 = vperm.slane %v1385_v57, %v2378_v8  ;;  %v1431_v20 = vsel %vm566_vm4, %v1430_v44, %v1389_v30  ;;  %v1432_v54 = vrot.slane %v1389_v30, 4 }
 0x412   :  { %v1437_v31 = vperm.slane %v1431_v20, %v2411_v15 }
 0x413   :  { %v1433_v14 = vsel %vm566_vm4, %v1401_v61, %v1432_v54  ;;  %v1443_v17 = vsel %vm566_vm4, %v1442_v4, %v1393_v6  ;;  %v1444_v45 = vrot.slane %v1393_v6, 4 }
 0x414   :  { %v1441_v37 = vperm.slane %v1433_v14, %v2411_v15  ;;  %v1449_v27 = vperm.slane %v1443_v17, %v2411_v15  ;;  %v1454_v51 = vrot.slane %v1437_v31, 4  ;;  %v1457_v63 = vsel %vm566_vm4, %v1437_v31, %v1456_v53 }
 0x415   :  { %v1445_v42 = vsel %vm566_vm4, %v1405_v34, %v1444_v45  ;;  %v1596_v52 = vrot.slane %v1457_v63, 4 }
 0x416   :  { %v1453_v46 = vperm.slane %v1445_v42, %v2411_v15  ;;  %v1455_v62 = vsel %vm566_vm4, %v1454_v51, %v1413_v59  ;;  %v1458_v48 = vrot.slane %v1441_v37, 4  ;;  %v1461_v58 = vsel %vm566_vm4, %v1441_v37, %v1460_v26 }
 0x417   :  { %v1462_v13 = vrot.slane %v1449_v27, 4  ;;  %v1584_v2 = vrot.slane %v1455_v62, 4  ;;  %v1594_v56 = vrot.slane %v1461_v58, 4  ;;  %v1465_v0 = vsel %vm566_vm4, %v1449_v27, %v1464_v55 }
 0x418   :  { %v1459_v24 = vsel %vm566_vm4, %v1458_v48, %v1417_v40  ;;  %v1466_v16 = vrot.slane %v1453_v46, 4  ;;  %v1469_v60 = vsel %vm566_vm4, %v1453_v46, %v1468_v12  ;;  %v1620_v50 = vrot.slane %v1465_v0, 4 }
 0x419   :  { %v1582_v47 = vrot.slane %v1459_v24, 4  ;;  %v1595_v11 = vsel %vm566_vm4, %v1594_v56, %v1457_v63  ;;  %v1463_v39 = vsel %vm566_vm4, %v1462_v13, %v1425_v28  ;;  %v1618_v36 = vrot.slane %v1469_v60, 4 }
 0x41a   :  { %v1467_v49 = vsel %vm566_vm4, %v1466_v16, %v1429_v41  ;;  %v1601_v25 = vperm.slane %v1595_v11, %v2378_v8  ;;  %v1608_v7 = vrot.slane %v1463_v39, 4  ;;  %v1585_v38 = vsel %vm566_vm4, %v1459_v24, %v1584_v2  ;;  %v1787_v11 = vld [vmem:[%s2981_s3 + $0x28] sm:$0xff] }
 0x41b   :  { %v1583_v9 = vsel %vm566_vm4, %v1582_v47, %v1455_v62  ;;  %v1606_v33 = vrot.slane %v1467_v49, 4  ;;  %v1619_v29 = vsel %vm566_vm4, %v1618_v36, %v1465_v0  ;;  %v1597_v23 = vsel %vm566_vm4, %v1461_v58, %v1596_v52  ;;  %v1788_v47 = vld [vmem:[%s2981_s3 + $0x30] sm:$0xff]  ;;  %v1785_v36 = vld [vmem:[%s2981_s3 + $0x18] sm:$0xff] }
 0x41c   :  { %v1589_v32 = vperm.slane %v1583_v9, %v2378_v8  ;;  %v1625_v22 = vperm.slane %v1619_v29, %v2378_v8  ;;  %v1630_v21 = vrot.slane %v1601_v25, 4  ;;  %v1605_v1 = vperm.slane %v1597_v23, %v2378_v8  ;;  %v1782_v9 = vld [vmem:[%s2981_s3] sm:$0xff] }
 0x41d   :  { %v1607_v61 = vsel %vm566_vm4, %v1606_v33, %v1463_v39  ;;  %v1609_v19 = vsel %vm566_vm4, %v1467_v49, %v1608_v7  ;;  %v1621_v3 = vsel %vm566_vm4, %v1469_v60, %v1620_v50  ;;  %v1593_v18 = vperm.slane %v1585_v38, %v2378_v8  ;;  %v1786_v39 = vld [vmem:[%s2981_s3 + $0x20] sm:$0xff]  ;;  %v1784_v49 = vld [vmem:[%s2981_s3 + $0x10] sm:$0xff] }
 0x41e   :  { %v1613_v35 = vperm.slane %v1607_v61, %v2378_v8  ;;  %v1631_v34 = vsel %vm566_vm4, %v1630_v21, %v1589_v32  ;;  %v1654_v10 = vrot.slane %v1625_v22, 4  ;;  %v1632_v59 = vrot.slane %v1589_v32, 4 }
 0x41f   :  { %v1637_v5 = vperm.slane %v1631_v34, %v2411_v15  ;;  %v1617_v40 = vperm.slane %v1609_v19, %v2378_v8  ;;  %v1629_v44 = vperm.slane %v1621_v3, %v2378_v8  ;;  %v1642_v57 = vrot.slane %v1605_v1, 4 }
 0x420   :  { %v1655_v30 = vsel %vm566_vm4, %v1654_v10, %v1613_v35  ;;  %v1633_v28 = vsel %vm566_vm4, %v1601_v25, %v1632_v59  ;;  %v1656_v41 = vrot.slane %v1613_v35, 4  ;;  %v1644_v37 = vrot.slane %v1593_v18, 4  ;;  %v1783_v25 = vld [vmem:[%s2981_s3 + $0x8] sm:$0xff] }
 0x421   :  { %v1661_v4 = vperm.slane %v1655_v30, %v2411_v15  ;;  %v1680_v6 = vrot.slane %v1637_v5, 4  ;;  %v1641_v20 = vperm.slane %v1633_v28, %v2411_v15  ;;  %v1666_v53 = vrot.slane %v1629_v44, 4 }
 0x422   :  { %v1657_v54 = vsel %vm566_vm4, %v1625_v22, %v1656_v41  ;;  %v1643_v17 = vsel %vm566_vm4, %v1642_v57, %v1593_v18  ;;  %v1668_v27 = vrot.slane %v1617_v40, 4  ;;  %v1645_v58 = vsel %vm566_vm4, %v1605_v1, %v1644_v37 }
 0x423   :  { %v1678_v31 = vrot.slane %v1661_v4, 4  ;;  %v1681_v26 = vsel %vm566_vm4, %v1661_v4, %v1680_v6  ;;  %v1665_v14 = vperm.slane %v1657_v54, %v2411_v15  ;;  %v1684_v8 = vrot.slane %v1641_v20, 4 }
 0x424   :  { %1698 = vrot.lane.b32.xlu0 %v1681_v26, %s2128_s13  ;;  %v1667_v45 = vsel %vm566_vm4, %v1666_v53, %v1617_v40  ;;  %v1669_v42 = vsel %vm566_vm4, %v1629_v44, %v1668_v27  ;;  %v1649_v46 = vperm.slane %v1643_v17, %v2411_v15  ;;  %v1653_v56 = vperm.slane %v1645_v58, %v2411_v15 }
 0x425   :  { %v1685_v51 = vsel %vm566_vm4, %v1665_v14, %v1684_v8  ;;  %v1682_v63 = vrot.slane %v1665_v14, 4  ;;  %v1673_v55 = vperm.slane %v1667_v45, %v2411_v15  ;;  %v2897_v12 = vsel %vm566_vm4, %v1678_v31, %v1637_v5 }
 0x426   :  { %1714 = vrot.lane.b32.xlu2 %v1685_v51, %s2132_s17  ;;  %v1677_v48 = vperm.slane %v1669_v42, %v2411_v15  ;;  %v1688_v0 = vrot.slane %v1649_v46, 4  ;;  %v1692_v60 = vrot.slane %v1653_v56, 4  ;;  %v1789_v15 = vld [vmem:[%s2981_s3 + $0x38] sm:$0xff]  ;;  %v2133_v44 = vmov 5   ;;  %s2134_s3 = smov 124  }
 0x427   :  { %v1683_v52 = vsel %vm566_vm4, %v1682_v63, %v1641_v20  ;;  %v1686_v62 = vrot.slane %v1673_v55, 4  ;;  %1805 = vmatpush.msra.mxu1 %v1789_v15  ;;  %2035 = vset.pattern.permute.xlu0 %v2133_v44 }
 0x428   :  { %1706 = vrot.lane.b32.xlu1 %v1683_v52, %s2127_s12  ;;  %v1690_v13 = vrot.slane %v1677_v48, 4  ;;  %v1689_v16 = vsel %vm566_vm4, %v1673_v55, %v1688_v0  ;;  %v1693_v50 = vsel %vm566_vm4, %v1677_v48, %v1692_v60 }
 0x429   :  { %v1687_v2 = vsel %vm566_vm4, %v1686_v62, %v1649_v46  ;;  %1806 = vmatpush.msra.mxu1 %v1788_v47  ;;  %2036 = vset.pattern.permute.xlu1 %v2133_v44 }
 0x42a   :  { %v1691_v24 = vsel %vm566_vm4, %v1690_v13, %v1653_v56 }
 0x42b   :  { %1807 = vmatpush.msra.mxu1 %v1787_v11 }
 0x42c   :  { %1722 = vrot.lane.b32.xlu0 %v1687_v2, %s2131_s16 }
 0x42d   :  { %1808 = vmatpush.msra.mxu1 %v1786_v39 }
 0x42e   :  { %1738 = vrot.lane.b32.xlu2 %v1691_v24, %s2130_s15 }
 0x42f   :  { %1809 = vmatpush.msra.mxu1 %v1785_v36 }
 0x430   :  { %1730 = vrot.lane.b32.xlu1 %v1689_v16, %s2129_s14  ;;  %v2114_v16 = vld [vmem:[%s2980_s1 + $0x8] sm:$0xff] }
 0x431   :  { %1810 = vmatpush.msra.mxu1 %v1784_v49 }
 0x433   :  { %1811 = vmatpush.msra.mxu1 %v1783_v25 }
 0x434   :  { %1746 = vrot.lane.b32.xlu0 %v1693_v50, %s2117_s2  ;;  %v2115_v50 = vld [vmem:[%s2980_s1] sm:$0xff] }
 0x435   :  { %1812 = vmatpush.msra.mxu1 %v1782_v9 }
 0x44a   :  { %v1697_v7 = vpop.permute.xlu2 %1696 }
 0x44b   :  { %v1751_v32 = vsel %vm1750_vm5, %v2805_v43, %v1697_v7 }
 0x452   :  { %v1721_v38 = vpop.permute.xlu2 %1720 }
 0x45a   :  { %v1745_v3 = vpop.permute.xlu2 %1744 }
 0x462   :  { %v1705_v29 = vpop.permute.xlu1 %1704 }
 0x463   :  { %v1753_v22 = vsel %vm346_vm3, %v1751_v32, %v1705_v29 }
 0x466   :  { %v1729_v33 = vpop.permute.xlu0 %1728 }
 0x46a   :  { %v1737_v1 = vpop.permute.xlu1 %1736 }
 0x46e   :  { %v1713_v21 = vpop.permute.xlu0 %1712 }
 0x46f   :  { %v1756_v23 = vsel %vm1755_vm6, %v1753_v22, %v1713_v21 }
 0x470   :  { %v1759_v61 = vsel %vm1758_vm7, %v1756_v23, %v1721_v38 }
 0x471   :  { %v1762_v19 = vsel %vm1761_vm8, %v1759_v61, %v1729_v33 }
 0x472   :  { %v1765_v35 = vsel %vm1764_vm9, %v1762_v19, %v1737_v1 }
 0x473   :  { %v1768_v34 = vsel %vm1767_vm10, %v1765_v35, %v1745_v3  ;;  %v2037_v3 = vld [vmem:[%s2982_s4] ss:$0 sm:$0xff] }
 0x474   :  { %v1772_v43 = vmin.f32 %v1768_v34, 0.0  ;;  %vm1770_vm12 = vcmp.gt.f32.partialorder %v1768_v34, 0.0 }
 0x476   :  { %v1774_v10 = vmul.f32 1.442695, %v1772_v43 }
 0x478   :  { %2102 = vpow2.f32 %v1774_v10 }
 0x47e   :  { %v2103_v59 = vpop.eup %2102 }
 0x47f   :  { %v1960_v5 = vadd.f32 -1.0, %v2103_v59 }
 0x480   :  { %v1715_v28 = vpop.permute.xlu2 %1714 }
 0x481   :  { %v1780_v18 = vsel %vm1770_vm12, %v1768_v34, %v1960_v5 }
 0x482   :  { %1962 = vmatmul.msk.f32.vlgmr.msra.gmra.mxu1 %vm1790_vm11, %v1780_v18 }
 0x488   :  { %v1739_v31 = vpop.permute.xlu2 %1738 }
 0x496   :  { %v1699_v40 = vpop.permute.xlu0 %1698 }
 0x497   :  { %v1752_v41 = vsel %vm1750_vm5, %v2897_v12, %v1699_v40 }
 0x49a   :  { %v1707_v30 = vpop.permute.xlu1 %1706 }
 0x49b   :  { %v1754_v57 = vsel %vm346_vm3, %v1752_v41, %v1707_v30 }
 0x49c   :  { %v1757_v6 = vsel %vm1755_vm6, %v1754_v57, %v1715_v28 }
 0x49e   :  { %v1723_v4 = vpop.permute.xlu0 %1722 }
 0x49f   :  { %v1760_v20 = vsel %vm1758_vm7, %v1757_v6, %v1723_v4 }
 0x4a2   :  { %v1731_v54 = vpop.permute.xlu1 %1730 }
 0x4a3   :  { %v1763_v53 = vsel %vm1761_vm8, %v1760_v20, %v1731_v54 }
 0x4a4   :  { %v1766_v14 = vsel %vm1764_vm9, %v1763_v53, %v1739_v31 }
 0x4a6   :  { %v1747_v26 = vpop.permute.xlu0 %1746 }
 0x4a7   :  { %v1769_v8 = vsel %vm1767_vm10, %v1766_v14, %v1747_v26 }
 0x4a8   :  { %v1773_v17 = vmin.f32 %v1769_v8, 0.0  ;;  %vm1771_vm13 = vcmp.gt.f32.partialorder %v1769_v8, 0.0 }
 0x4aa   :  { %v1776_v45 = vmul.f32 1.442695, %v1773_v17 }
 0x4ac   :  { %2104 = vpow2.f32 %v1776_v45 }
 0x4b2   :  { %v2105_v37 = vpop.eup %2104 }
 0x4b3   :  { %v1961_v27 = vadd.f32 -1.0, %v2105_v37 }
 0x4b5   :  { %v1781_v51 = vsel %vm1771_vm13, %v1769_v8, %v1961_v27 }
 0x4b6   :  { %1963 = vmatmul.msk.f32.gmra.mxu1 %vm1790_vm11, %v1781_v51 }
 0x4ff   :  { %v1814_v63 = vpop.f32.mrf.mxu1 }
 0x500   :  { %1822 = vrot.lane.b32.xlu1 %v1814_v63, %s2134_s3  ;;  %1861 = vperm.xlu0 %2035, %v1814_v63  }
 0x533   :  { %v1817_v55 = vpop.f32.mrf.mxu1 }
 0x534   :  { %1865 = vperm.xlu1 %2036, %v1817_v55   ;;  %1824 = vrot.lane.b32.xlu2 %v1817_v55, %s2134_s3 }
 0x535   :  { %1925 = vmatpush.msra.mxu2 %v1817_v55 }
 0x537   :  { %1926 = vmatpush.msra.mxu2 %v1814_v63 }
 0x572   :  { %v1823_v12 = vpop.permute.xlu1 %1822  ;;  %v1862_v62 = vpop.permute.xlu0 %1861 }
 0x573   :  { %1828 = vxpose.xlu2.b32.start [1/2] (short) (narrow) %v1823_v12, 8 }
 0x58e   :  { %v1825_v42 = vpop.permute.xlu2 %1824 }
 0x58f   :  { %1829 = vxpose.xlu2.b32.end [2/2] (short) (narrow) %v1825_v42, 8 }
 0x5a6   :  { %v1866_v48 = vpop.permute.xlu1 %1865 }
 0x620   :  { %v1844_v52 = vpop.trf.xlu2 }
 0x621   :  { %v1868_v46 = vperm.slane %v1844_v52, 0 }
 0x623   :  { %v1869_v58 = vadd.f32 %v1868_v46, %v1862_v62  ;;  %v1870_v13 = vadd.f32 %v1868_v46, %v1866_v48 }
 0x625   :  { %v1873_v2 = vmul.f32 0.2, %v1869_v58  ;;  %v1874_v56 = vmul.f32 0.2, %v1870_v13  ;;  %vm1872_vm14 = vcmp.gt.f32.partialorder %v1870_v13, 0.0  ;;  %vm1871_vm15 = vcmp.gt.f32.partialorder %v1869_v58, 0.0 }
 0x627   :  { %v1876_v0 = vsel %vm1872_vm14, %v1870_v13, %v1874_v56  ;;  %v1875_v24 = vsel %vm1871_vm15, %v1869_v58, %v1873_v2 }
 0x628   :  { %v1878_v60 = vadd.f32 %v2114_v16, %v1876_v0  ;;  %v1877_v15 = vadd.f32 %v2115_v50, %v1875_v24 }
 0x62a   :  { %v1882_v47 = vsel %vm346_vm3, %v1878_v60, -inf  ;;  %v1879_v11 = vsel %vm346_vm3, %v1877_v15, -inf }
 0x62b   :  { %1883 = vmax.xlane.f32.xlu0 %v1882_v47  ;;  %1880 = vmax.xlane.f32.xlu1 %v1879_v11 }
 0x69e   :  { %v1884_v39 = vpop.xlane.xlu0 %1883  ;;  %v1881_v36 = vpop.xlane.xlu1 %1880 }
 0x69f   :  { %v1886_v49 = vsub.f32 %v1878_v60, %v1884_v39  ;;  %v1885_v25 = vsub.f32 %v1877_v15, %v1881_v36 }
 0x6a1   :  { %v1889_v7 = vmul.f32 1.442695, %v1886_v49  ;;  %v1887_v9 = vmul.f32 1.442695, %v1885_v25 }
 0x6a3   :  { %2106 = vpow2.f32 %v1889_v7 }
 0x6a4   :  { %2108 = vpow2.f32 %v1887_v9 }
 0x6a9   :  { %v2107_v33 = vpop.eup %2106 }
 0x6aa   :  { %v2109_v29 = vpop.eup %2108  ;;  %v1894_v38 = vsel %vm346_vm3, %v2107_v33, 0.0 }
 0x6ab   :  { %1895 = vadd.xlane.f32.xlu2 %v1894_v38  ;;  %v1891_v32 = vsel %vm346_vm3, %v2109_v29, 0.0 }
 0x6ac   :  { %1892 = vadd.xlane.f32.xlu1 %v1891_v32 }
 0x71e   :  { %v1896_v21 = vpop.xlane.xlu2 %1895 }
 0x71f   :  { %v1893_v22 = vpop.xlane.xlu1 %1892 }
 0x720   :  { %2110 = vrcp.f32 %v1893_v22 }
 0x721   :  { %2112 = vrcp.f32 %v1896_v21 }
 0x726   :  { %v2111_v23 = vpop.eup %2110 }
 0x727   :  { %v1899_v61 = vmul.f32 %v2111_v23, %v2109_v29  ;;  %v2113_v1 = vpop.eup %2112 }
 0x728   :  { %v1900_v19 = vmul.f32 %v2113_v1, %v2107_v33 }
 0x729   :  { %1964 = vmatmul.msk.f32.vlgmr.msra.gmra.mxu2 %vm346_vm3, %v1899_v61 }
 0x731   :  { %1965 = vmatmul.msk.f32.gmra.mxu2 %vm346_vm3, %v1900_v19 }
 0x7ac   :  { %v1928_v35 = vpop.f32.mrf.mxu2 }
 0x7ad   :  { %v1929_v34 = vadd.f32 %v2037_v3, %v1928_v35 }
 0x7af   :  { %1935 = vst.msk [vmem:[%s2983_s5] sm:$0xff] %vm1934_vm0, %v1929_v34 }
 0x7b4   :  { %v1931_v43 = vpop.f32.mrf.mxu2 }
 0x7b5   :  { %v1932_v10 = vadd.f32 %v2037_v3, %v1931_v43 }
 0x7b7   :  { %1936 = vst.msk [vmem:[%s2983_s5 + $0x8] sm:$0xff] %vm1934_vm0, %v1932_v10 }

</bundles_post_ra>
